<compile_context>
chip_gen: v7x
topology: tpu7x:2x2x1
jax: 0.10.0
libtpu: 0.0.40
codegen_flags: <defaults>
</compile_context>

<pallas_src>
import functools
import math

import jax
import jax.numpy as jnp
from jax.experimental import pallas as pl
from jax.experimental.pallas import tpu as pltpu

# ---- small synthetic hyperparameters consistent with the module ----
VOCAB = 32        # vocab size for tok_emb
BLOCK_SIZE = 8    # max sequence length (pos_emb is [1, BLOCK_SIZE, D])
N_EMBD = 32       # embedding dim D
N_HEAD = 4        # attention heads
N_LAYER = 2       # number of transformer blocks
N_CLASSES = 10    # linear-probe head output classes
C_PAD = 128       # lane-dense padded logits width (sliced to N_CLASSES)
LN_EPS = 1e-5     # torch.nn.LayerNorm default
NEG_INF = -1e30   # finite mask value (diag always unmasked -> same as -inf)


# ---------------- in-kernel math helpers (pure jnp, trace into Mosaic) -------
def _layernorm(x, w, b):
    mu = jnp.mean(x, axis=-1, keepdims=True)
    xc = x - mu
    var = jnp.mean(xc * xc, axis=-1, keepdims=True)
    return xc * jax.lax.rsqrt(var + LN_EPS) * w + b


def _gelu_tanh(x):
    # tanh-approximate GELU (minGPT "NewGELU")
    c = math.sqrt(2.0 / math.pi)
    return 0.5 * x * (1.0 + jnp.tanh(c * (x + 0.044715 * x * x * x)))


def _div_mod(v, t):
    # integer div/mod by the (static) sequence length; cheap shift/mask when
    # t is a power of two (always true here since BLOCK_SIZE = 8).
    if t & (t - 1) == 0:
        shift = t.bit_length() - 1
        return v >> shift, v & (t - 1)
    return v // t, v % t


# ------------------------------- Pallas kernel -------------------------------
def linear_probe_gpt_kernel(
    x_ref,        # [M, D]     tok+pos embeddings for this batch tile (M = B_TILE*T)
    lnv_ref,      # [L, 6, D]  (ln1_w, ln1_b, ln2_w, ln2_b, attn-proj b, mlp-proj b)
    wqkv_ref,     # [L, D, 3D] fused QKV weight
    bqkv_ref,     # [L, 1, 3D] fused QKV bias
    wo_ref,       # [L, D, D]  attention output projection
    wfc_ref,      # [L, D, H]  mlp fc weight
    bfc_ref,      # [L, 1, H]  mlp fc bias
    wpr_ref,      # [L, H, D]  mlp proj weight
    lnf_ref,      # [2, D]     final ln_1 weight / bias
    headw_ref,    # [D, C_PAD] zero-padded head weight
    headb_ref,    # [1, C_PAD] zero-padded head bias
    out_ref,      # [1, B_TILE, C_PAD]
    *, b_tile, seq_t,
):
    D = N_EMBD
    hd = D // N_HEAD
    M = b_tile * seq_t

    # x = drop(tok_emb(idx) + pos_emb[:, :t, :]) -- dropout is identity (eval)
    x = x_ref[...]                                            # [M, D]

    # ---- masks hoisted out of the layer loop (computed once per program) ----
    r = jax.lax.broadcasted_iota(jnp.int32, (M, M), 0)
    c = jax.lax.broadcasted_iota(jnp.int32, (M, M), 1)
    seq_r, pos_r = _div_mod(r, seq_t)
    seq_c, pos_c = _div_mod(c, seq_t)
    attn_mask = (seq_r == seq_c) & (pos_c <= pos_r)           # block-diag + causal

    lane = jax.lax.broadcasted_iota(jnp.int32, (1, D), 1)
    head_masks = [
        ((lane >= h * hd) & (lane < (h + 1) * hd)).astype(jnp.float32)
        for h in range(N_HEAD)
    ]
    scale = 1.0 / math.sqrt(hd)

    # TODO(synk): `self.blocks` is an injected submodule ("third-order attention"
    # definition not provided); standard pre-LN causal self-attention + tanh-GELU
    # MLP transformer blocks are implemented here.
    for l in range(N_LAYER):
        lv = lnv_ref[l]                                       # [6, D]

        # ---- attention sub-block (fused QKV, head masks, no concatenate) ----
        h1 = _layernorm(x, lv[0], lv[1])
        qkv = jnp.dot(h1, wqkv_ref[l],
                      preferred_element_type=jnp.float32) + bqkv_ref[l]
        q = qkv[:, 0 * D:1 * D]
        k = qkv[:, 1 * D:2 * D]
        v = qkv[:, 2 * D:3 * D]
        ycat = jnp.zeros_like(x)
        for hm in head_masks:
            att = jax.lax.dot_general(
                q * hm, k, (((1,), (1,)), ((), ())),
                preferred_element_type=jnp.float32) * scale   # [M, M]
            att = jnp.where(attn_mask, att, NEG_INF)
            att = att - jnp.max(att, axis=-1, keepdims=True)
            p = jnp.exp(att)
            probs = p * pl.reciprocal(jnp.sum(p, axis=-1, keepdims=True),
                                      approx=True)
            # columns outside this head's slice are zeroed -> accumulation over
            # heads reconstructs the concatenated multi-head output exactly.
            ycat = ycat + jnp.dot(probs, v * hm,
                                  preferred_element_type=jnp.float32)
        x = x + jnp.dot(ycat, wo_ref[l],
                        preferred_element_type=jnp.float32) + lv[4]

        # ---- MLP sub-block ----
        h2 = _layernorm(x, lv[2], lv[3])
        h2 = jnp.dot(h2, wfc_ref[l],
                     preferred_element_type=jnp.float32) + bfc_ref[l]
        h2 = _gelu_tanh(h2)
        x = x + jnp.dot(h2, wpr_ref[l],
                        preferred_element_type=jnp.float32) + lv[5]

    # ---- final LayerNorm, per-sequence mean (MXU averaging matmul), head ----
    lnf = lnf_ref[...]
    x = _layernorm(x, lnf[0], lnf[1])
    rb = jax.lax.broadcasted_iota(jnp.int32, (b_tile, M), 0)
    cb = jax.lax.broadcasted_iota(jnp.int32, (b_tile, M), 1)
    cseq, _ = _div_mod(cb, seq_t)
    avg = (rb == cseq).astype(jnp.float32) * (1.0 / seq_t)    # [B_TILE, M]
    xm = jnp.dot(avg, x, preferred_element_type=jnp.float32)  # [B_TILE, D]
    logits = jnp.dot(xm, headw_ref[...],
                     preferred_element_type=jnp.float32) + headb_ref[...]
    out_ref[...] = logits.reshape(1, b_tile, C_PAD)


# ------------------------------- param packing --------------------------------
def pack_params(p):
    """Repack the natural per-layer parameters into the kernel's fused layout."""
    D = N_EMBD
    w_qkv = jnp.concatenate([p["wq"], p["wk"], p["wv"]], axis=-1)           # [L, D, 3D]
    b_qkv = jnp.concatenate([p["bq"], p["bk"], p["bv"]], axis=-1)[:, None]  # [L, 1, 3D]
    lnv = jnp.stack([p["ln1_w"], p["ln1_b"], p["ln2_w"], p["ln2_b"],
                     p["bo"], p["bpr"]], axis=1)                            # [L, 6, D]
    b_fc = p["bfc"][:, None]                                                # [L, 1, H]
    lnf = jnp.stack([p["lnf_w"], p["lnf_b"]], axis=0)                       # [2, D]
    head_w = jnp.zeros((D, C_PAD), jnp.float32).at[:, :N_CLASSES].set(p["head_w"])
    head_b = jnp.zeros((1, C_PAD), jnp.float32).at[0, :N_CLASSES].set(p["head_b"])
    return (lnv, w_qkv, b_qkv, p["wo"], p["wfc"], b_fc, p["wpr"],
            lnf, head_w, head_b)


# ------------------------------- wrapper --------------------------------------
def linear_probe_gpt_forward(idx, p, *, num_batch_tiles=None):
    B, T = idx.shape
    D, L, H = N_EMBD, N_LAYER, 4 * N_EMBD
    if num_batch_tiles is None:
        # Fold the whole batch into as few programs as possible; keep 2 tiles
        # when we can so both v7x TensorCores get work (1 TC on v5e/v6e).
        num_batch_tiles = 2 if (B % 2 == 0 and B >= 4) else 1
    assert B % num_batch_tiles == 0, "B must divide evenly into batch tiles"
    b_tile = B // num_batch_tiles
    M = b_tile * T

    # glue: embedding gather + positional add, flattened to a [B*T, D] slab
    x0 = (jnp.take(p["tok_emb"], idx, axis=0)
          + p["pos_emb"][0, :T, :]).astype(jnp.float32).reshape(B * T, D)

    packed = pack_params(p)

    def inv(shape):  # grid-invariant (weight) block: same block every step
        return pl.BlockSpec(shape, lambda i, n=len(shape): (0,) * n)

    in_specs = [
        pl.BlockSpec((M, D), lambda i: (i, 0)),   # activations per batch tile
        inv((L, 6, D)),                           # packed per-layer vectors
        inv((L, D, 3 * D)), inv((L, 1, 3 * D)),   # fused QKV w, b
        inv((L, D, D)),                           # attn out proj
        inv((L, D, H)), inv((L, 1, H)),           # mlp fc w, b
        inv((L, H, D)),                           # mlp proj w
        inv((2, D)),                              # final ln_1 w, b
        inv((D, C_PAD)), inv((1, C_PAD)),         # lane-dense padded head
    ]

    kernel = functools.partial(linear_probe_gpt_kernel, b_tile=b_tile, seq_t=T)
    out = pl.pallas_call(
        kernel,
        out_shape=jax.ShapeDtypeStruct((num_batch_tiles, b_tile, C_PAD), jnp.float32),
        grid_spec=pltpu.PrefetchScalarGridSpec(
            num_scalar_prefetch=0,
            grid=(num_batch_tiles,),
            in_specs=in_specs,
            out_specs=pl.BlockSpec((1, b_tile, C_PAD), lambda i: (i, 0, 0)),
        ),
        compiler_params=pltpu.CompilerParams(dimension_semantics=("parallel",)),
    )(x0, *packed)
    return out.reshape(B, C_PAD)[:, :N_CLASSES]   # [B, C]


# ------------------------------- params & reference ---------------------------
def init_params(key):
    D, L, H, C = N_EMBD, N_LAYER, 4 * N_EMBD, N_CLASSES
    ks = jax.random.split(key, 9)

    def nrm(k, shape):
        return 0.02 * jax.random.normal(k, shape, jnp.float32)

    return dict(
        tok_emb=nrm(ks[0], (VOCAB, D)),
        pos_emb=nrm(ks[1], (1, BLOCK_SIZE, D)),
        ln1_w=jnp.ones((L, D), jnp.float32), ln1_b=jnp.zeros((L, D), jnp.float32),
        wq=nrm(ks[2], (L, D, D)), bq=jnp.zeros((L, D), jnp.float32),
        wk=nrm(ks[3], (L, D, D)), bk=jnp.zeros((L, D), jnp.float32),
        wv=nrm(ks[4], (L, D, D)), bv=jnp.zeros((L, D), jnp.float32),
        wo=nrm(ks[5], (L, D, D)), bo=jnp.zeros((L, D), jnp.float32),
        ln2_w=jnp.ones((L, D), jnp.float32), ln2_b=jnp.zeros((L, D), jnp.float32),
        wfc=nrm(ks[6], (L, D, H)), bfc=jnp.zeros((L, H), jnp.float32),
        wpr=nrm(ks[7], (L, H, D)), bpr=jnp.zeros((L, D), jnp.float32),
        lnf_w=jnp.ones((D,), jnp.float32), lnf_b=jnp.zeros((D,), jnp.float32),
        head_w=nrm(ks[8], (D, C)), head_b=jnp.zeros((C,), jnp.float32),
    )


def reference_forward(idx, p):
    B, T = idx.shape
    hd = N_EMBD // N_HEAD
    scale = 1.0 / math.sqrt(hd)
    x = jnp.take(p["tok_emb"], idx, axis=0) + p["pos_emb"][:, :T, :]
    row = jax.lax.broadcasted_iota(jnp.int32, (T, T), 0)
    col = jax.lax.broadcasted_iota(jnp.int32, (T, T), 1)
    causal = col <= row
    outs = []
    for b in range(B):
        xb = x[b]
        for l in range(N_LAYER):
            h = _layernorm(xb, p["ln1_w"][l], p["ln1_b"][l])
            q = h @ p["wq"][l] + p["bq"][l]
            k = h @ p["wk"][l] + p["bk"][l]
            v = h @ p["wv"][l] + p["bv"][l]
            heads = []
            for hh in range(N_HEAD):
                sl = slice(hh * hd, (hh + 1) * hd)
                att = (q[:, sl] @ k[:, sl].T) * scale
                att = jnp.where(causal, att, -jnp.inf)
                att = jax.nn.softmax(att, axis=-1)
                heads.append(att @ v[:, sl])
            y = jnp.concatenate(heads, axis=-1)
            xb = xb + (y @ p["wo"][l] + p["bo"][l])
            h = _layernorm(xb, p["ln2_w"][l], p["ln2_b"][l])
            h = _gelu_tanh(h @ p["wfc"][l] + p["bfc"][l])
            xb = xb + (h @ p["wpr"][l] + p["bpr"][l])
        xb = _layernorm(xb, p["lnf_w"], p["lnf_b"])
        outs.append(jnp.mean(xb, axis=0) @ p["head_w"] + p["head_b"])
    return jnp.stack(outs)


if __name__ == "__main__":
    key = jax.random.PRNGKey(0)
    k_idx, k_param = jax.random.split(key)
    params = init_params(k_param)

    B, T = 4, BLOCK_SIZE
    idx = jax.random.randint(k_idx, (B, T), 0, VOCAB, dtype=jnp.int32)

    logits = linear_probe_gpt_forward(idx, params)
    logits = jax.block_until_ready(logits)

    ref = reference_forward(idx, params)
    assert logits.shape == (B, N_CLASSES)
    # slightly looser than before: the kernel uses the EUP approximate
    # reciprocal for the softmax denominator.
    assert jnp.allclose(logits, ref, rtol=5e-3, atol=5e-4), "mismatch vs reference"
    print("KERNEL_OK")
</pallas_src>

<mosaic_0001>
module attributes {stable_mosaic.version = 11 : i64} {
  func.func @linear_probe_gpt_kernel(%arg0: i32, %arg1: memref<16x32xf32, #tpu.memory_space<vmem>>, %arg2: memref<2x6x32xf32, #tpu.memory_space<vmem>>, %arg3: memref<2x32x96xf32, #tpu.memory_space<vmem>>, %arg4: memref<2x1x96xf32, #tpu.memory_space<vmem>>, %arg5: memref<2x32x32xf32, #tpu.memory_space<vmem>>, %arg6: memref<2x32x128xf32, #tpu.memory_space<vmem>>, %arg7: memref<2x1x128xf32, #tpu.memory_space<vmem>>, %arg8: memref<2x128x32xf32, #tpu.memory_space<vmem>>, %arg9: memref<2x32xf32, #tpu.memory_space<vmem>>, %arg10: memref<32x128xf32, #tpu.memory_space<vmem>>, %arg11: memref<1x128xf32, #tpu.memory_space<vmem>>, %arg12: memref<1x2x128xf32, #tpu.memory_space<vmem>>) attributes {dimension_semantics = [#tpu.dimension_semantics<parallel>], iteration_bounds = array<i64: 2>, scalar_prefetch = 0 : i64, scratch_operands = 0 : i64, tpu.core_type = #tpu.core_type<tc>, window_params = [{transform_indices = @transform_0, window_bounds = array<i64: 16, 32>}, {pipeline_mode = #tpu.pipeline_mode<synchronous>, transform_indices = @transform_1, window_bounds = array<i64: 2, 6, 32>}, {pipeline_mode = #tpu.pipeline_mode<synchronous>, transform_indices = @transform_2, window_bounds = array<i64: 2, 32, 96>}, {pipeline_mode = #tpu.pipeline_mode<synchronous>, transform_indices = @transform_3, window_bounds = array<i64: 2, 1, 96>}, {pipeline_mode = #tpu.pipeline_mode<synchronous>, transform_indices = @transform_4, window_bounds = array<i64: 2, 32, 32>}, {pipeline_mode = #tpu.pipeline_mode<synchronous>, transform_indices = @transform_5, window_bounds = array<i64: 2, 32, 128>}, {pipeline_mode = #tpu.pipeline_mode<synchronous>, transform_indices = @transform_6, window_bounds = array<i64: 2, 1, 128>}, {pipeline_mode = #tpu.pipeline_mode<synchronous>, transform_indices = @transform_7, window_bounds = array<i64: 2, 128, 32>}, {pipeline_mode = #tpu.pipeline_mode<synchronous>, transform_indices = @transform_8, window_bounds = array<i64: 2, 32>}, {pipeline_mode = #tpu.pipeline_mode<synchronous>, transform_indices = @transform_9, window_bounds = array<i64: 32, 128>}, {pipeline_mode = #tpu.pipeline_mode<synchronous>, transform_indices = @transform_10, window_bounds = array<i64: 1, 128>}, {transform_indices = @transform_11, window_bounds = array<i64: 1, 2, 128>}]} {
    %c0 = arith.constant 0 : index
    %c0_0 = arith.constant 0 : index
    %0 = vector.load %arg1[%c0, %c0_0] : memref<16x32xf32, #tpu.memory_space<vmem>>, vector<16x32xf32>
    %1 = tpu.iota {dimensions = array<i32: 0>} : vector<16x16xi32>
    %2 = tpu.iota {dimensions = array<i32: 1>} : vector<16x16xi32>
    %c3_i32 = arith.constant 3 : i32
    %3 = vector.broadcast %c3_i32 : i32 to vector<16x16xi32>
    %4 = arith.shrsi %1, %3 : vector<16x16xi32>
    %c7_i32 = arith.constant 7 : i32
    %5 = vector.broadcast %c7_i32 : i32 to vector<16x16xi32>
    %6 = arith.andi %1, %5 : vector<16x16xi32>
    %c3_i32_1 = arith.constant 3 : i32
    %7 = vector.broadcast %c3_i32_1 : i32 to vector<16x16xi32>
    %8 = arith.shrsi %2, %7 : vector<16x16xi32>
    %c7_i32_2 = arith.constant 7 : i32
    %9 = vector.broadcast %c7_i32_2 : i32 to vector<16x16xi32>
    %10 = arith.andi %2, %9 : vector<16x16xi32>
    %11 = arith.cmpi eq, %4, %8 : vector<16x16xi32>
    %12 = arith.cmpi sle, %10, %6 : vector<16x16xi32>
    %13 = arith.andi %11, %12 : vector<16x16xi1>
    %14 = tpu.iota {dimensions = array<i32: 1>} : vector<1x32xi32>
    %c0_i32 = arith.constant 0 : i32
    %15 = vector.broadcast %c0_i32 : i32 to vector<1x32xi32>
    %16 = arith.cmpi sge, %14, %15 : vector<1x32xi32>
    %c8_i32 = arith.constant 8 : i32
    %17 = vector.broadcast %c8_i32 : i32 to vector<1x32xi32>
    %18 = arith.cmpi slt, %14, %17 : vector<1x32xi32>
    %19 = arith.andi %16, %18 : vector<1x32xi1>
    %20 = arith.extui %19 : vector<1x32xi1> to vector<1x32xi32>
    %21 = arith.sitofp %20 : vector<1x32xi32> to vector<1x32xf32>
    %c8_i32_3 = arith.constant 8 : i32
    %22 = vector.broadcast %c8_i32_3 : i32 to vector<1x32xi32>
    %23 = arith.cmpi sge, %14, %22 : vector<1x32xi32>
    %c16_i32 = arith.constant 16 : i32
    %24 = vector.broadcast %c16_i32 : i32 to vector<1x32xi32>
    %25 = arith.cmpi slt, %14, %24 : vector<1x32xi32>
    %26 = arith.andi %23, %25 : vector<1x32xi1>
    %27 = arith.extui %26 : vector<1x32xi1> to vector<1x32xi32>
    %28 = arith.sitofp %27 : vector<1x32xi32> to vector<1x32xf32>
    %c16_i32_4 = arith.constant 16 : i32
    %29 = vector.broadcast %c16_i32_4 : i32 to vector<1x32xi32>
    %30 = arith.cmpi sge, %14, %29 : vector<1x32xi32>
    %c24_i32 = arith.constant 24 : i32
    %31 = vector.broadcast %c24_i32 : i32 to vector<1x32xi32>
    %32 = arith.cmpi slt, %14, %31 : vector<1x32xi32>
    %33 = arith.andi %30, %32 : vector<1x32xi1>
    %34 = arith.extui %33 : vector<1x32xi1> to vector<1x32xi32>
    %35 = arith.sitofp %34 : vector<1x32xi32> to vector<1x32xf32>
    %c24_i32_5 = arith.constant 24 : i32
    %36 = vector.broadcast %c24_i32_5 : i32 to vector<1x32xi32>
    %37 = arith.cmpi sge, %14, %36 : vector<1x32xi32>
    %c32_i32 = arith.constant 32 : i32
    %38 = vector.broadcast %c32_i32 : i32 to vector<1x32xi32>
    %39 = arith.cmpi slt, %14, %38 : vector<1x32xi32>
    %40 = arith.andi %37, %39 : vector<1x32xi1>
    %41 = arith.extui %40 : vector<1x32xi1> to vector<1x32xi32>
    %42 = arith.sitofp %41 : vector<1x32xi32> to vector<1x32xf32>
    %c0_6 = arith.constant 0 : index
    %c0_7 = arith.constant 0 : index
    %c0_8 = arith.constant 0 : index
    %43 = vector.load %arg2[%c0_6, %c0_7, %c0_8] : memref<2x6x32xf32, #tpu.memory_space<vmem>>, vector<1x6x32xf32>
    %44 = vector.shape_cast %43 : vector<1x6x32xf32> to vector<6x32xf32>
    %45 = vector.extract_strided_slice %44 {offsets = [0, 0], sizes = [1, 32], strides = [1, 1]} : vector<6x32xf32> to vector<1x32xf32>
    %46 = vector.shape_cast %45 : vector<1x32xf32> to vector<32xf32>
    %47 = vector.extract_strided_slice %44 {offsets = [1, 0], sizes = [1, 32], strides = [1, 1]} : vector<6x32xf32> to vector<1x32xf32>
    %48 = vector.shape_cast %47 : vector<1x32xf32> to vector<32xf32>
    %cst = arith.constant dense<0.000000e+00> : vector<16xf32>
    %49 = vector.multi_reduction <add>, %0, %cst [1] : vector<16x32xf32> to vector<16xf32>
    %50 = vector.shape_cast %49 : vector<16xf32> to vector<16x1xf32>
    %cst_9 = arith.constant 3.200000e+01 : f32
    %51 = vector.broadcast %cst_9 : f32 to vector<16x1xf32>
    %52 = arith.divf %50, %51 : vector<16x1xf32>
    %53 = vector.broadcast %52 : vector<16x1xf32> to vector<16x32xf32>
    %54 = arith.subf %0, %53 : vector<16x32xf32>
    %55 = arith.mulf %54, %54 : vector<16x32xf32>
    %cst_10 = arith.constant dense<0.000000e+00> : vector<16xf32>
    %56 = vector.multi_reduction <add>, %55, %cst_10 [1] : vector<16x32xf32> to vector<16xf32>
    %57 = vector.shape_cast %56 : vector<16xf32> to vector<16x1xf32>
    %cst_11 = arith.constant 3.200000e+01 : f32
    %58 = vector.broadcast %cst_11 : f32 to vector<16x1xf32>
    %59 = arith.divf %57, %58 : vector<16x1xf32>
    %cst_12 = arith.constant 9.99999974E-6 : f32
    %60 = vector.broadcast %cst_12 : f32 to vector<16x1xf32>
    %61 = arith.addf %59, %60 : vector<16x1xf32>
    %62 = math.rsqrt %61 : vector<16x1xf32>
    %63 = vector.broadcast %62 : vector<16x1xf32> to vector<16x32xf32>
    %64 = arith.mulf %54, %63 : vector<16x32xf32>
    %65 = vector.shape_cast %46 : vector<32xf32> to vector<1x32xf32>
    %66 = vector.broadcast %65 : vector<1x32xf32> to vector<16x32xf32>
    %67 = arith.mulf %64, %66 : vector<16x32xf32>
    %68 = vector.shape_cast %48 : vector<32xf32> to vector<1x32xf32>
    %69 = vector.broadcast %68 : vector<1x32xf32> to vector<16x32xf32>
    %70 = arith.addf %67, %69 : vector<16x32xf32>
    %c0_13 = arith.constant 0 : index
    %c0_14 = arith.constant 0 : index
    %c0_15 = arith.constant 0 : index
    %71 = vector.load %arg3[%c0_13, %c0_14, %c0_15] : memref<2x32x96xf32, #tpu.memory_space<vmem>>, vector<1x32x96xf32>
    %72 = vector.shape_cast %71 : vector<1x32x96xf32> to vector<32x96xf32>
    %cst_16 = arith.constant dense<0.000000e+00> : vector<16x96xf32>
    %73 = tpu.matmul %70, %72, %cst_16 {dimension_numbers = #tpu.dot_dimension_numbers<[1], [0], [0], [1], [0, 0, 1, 1], [], []>} : vector<16x32xf32>, vector<32x96xf32>, vector<16x96xf32> -> vector<16x96xf32>
    %c0_17 = arith.constant 0 : index
    %c0_18 = arith.constant 0 : index
    %c0_19 = arith.constant 0 : index
    %74 = vector.load %arg4[%c0_17, %c0_18, %c0_19] : memref<2x1x96xf32, #tpu.memory_space<vmem>>, vector<1x1x96xf32>
    %75 = vector.shape_cast %74 : vector<1x1x96xf32> to vector<1x96xf32>
    %76 = vector.broadcast %75 : vector<1x96xf32> to vector<16x96xf32>
    %77 = arith.addf %73, %76 : vector<16x96xf32>
    %78 = vector.extract_strided_slice %77 {offsets = [0, 0], sizes = [16, 32], strides = [1, 1]} : vector<16x96xf32> to vector<16x32xf32>
    %79 = vector.extract_strided_slice %77 {offsets = [0, 32], sizes = [16, 32], strides = [1, 1]} : vector<16x96xf32> to vector<16x32xf32>
    %80 = vector.extract_strided_slice %77 {offsets = [0, 64], sizes = [16, 32], strides = [1, 1]} : vector<16x96xf32> to vector<16x32xf32>
    %cst_20 = arith.constant 0.000000e+00 : f32
    %81 = vector.broadcast %cst_20 : f32 to vector<16x32xf32>
    %82 = vector.broadcast %21 : vector<1x32xf32> to vector<16x32xf32>
    %83 = arith.mulf %78, %82 : vector<16x32xf32>
    %cst_21 = arith.constant dense<0.000000e+00> : vector<16x16xf32>
    %84 = tpu.matmul %83, %79, %cst_21 {dimension_numbers = #tpu.dot_dimension_numbers<[1], [1], [0], [0], [0, 0, 1, 0], [], []>} : vector<16x32xf32>, vector<16x32xf32>, vector<16x16xf32> -> vector<16x16xf32>
    %cst_22 = arith.constant 0.353553385 : f32
    %85 = vector.broadcast %cst_22 : f32 to vector<16x16xf32>
    %86 = arith.mulf %84, %85 : vector<16x16xf32>
    %cst_23 = arith.constant -1.000000e+30 : f32
    %87 = vector.broadcast %cst_23 : f32 to vector<16x16xf32>
    %88 = arith.select %13, %86, %87 : vector<16x16xi1>, vector<16x16xf32>
    %cst_24 = arith.constant dense<0xFF800000> : vector<16xf32>
    %89 = vector.multi_reduction <maximumf>, %88, %cst_24 [1] : vector<16x16xf32> to vector<16xf32>
    %90 = vector.shape_cast %89 : vector<16xf32> to vector<16x1xf32>
    %91 = vector.broadcast %90 : vector<16x1xf32> to vector<16x16xf32>
    %92 = arith.subf %88, %91 : vector<16x16xf32>
    %93 = math.exp %92 : vector<16x16xf32>
    %cst_25 = arith.constant dense<0.000000e+00> : vector<16xf32>
    %94 = vector.multi_reduction <add>, %93, %cst_25 [1] : vector<16x16xf32> to vector<16xf32>
    %95 = vector.shape_cast %94 : vector<16xf32> to vector<16x1xf32>
    %96 = tpu.reciprocal %95 {approx = true} : vector<16x1xf32> -> vector<16x1xf32>
    %97 = vector.broadcast %96 : vector<16x1xf32> to vector<16x16xf32>
    %98 = arith.mulf %93, %97 : vector<16x16xf32>
    %99 = vector.broadcast %21 : vector<1x32xf32> to vector<16x32xf32>
    %100 = arith.mulf %80, %99 : vector<16x32xf32>
    %cst_26 = arith.constant dense<0.000000e+00> : vector<16x32xf32>
    %101 = tpu.matmul %98, %100, %cst_26 {dimension_numbers = #tpu.dot_dimension_numbers<[1], [0], [0], [1], [0, 0, 1, 1], [], []>} : vector<16x16xf32>, vector<16x32xf32>, vector<16x32xf32> -> vector<16x32xf32>
    %102 = arith.addf %81, %101 : vector<16x32xf32>
    %103 = vector.broadcast %28 : vector<1x32xf32> to vector<16x32xf32>
    %104 = arith.mulf %78, %103 : vector<16x32xf32>
    %cst_27 = arith.constant dense<0.000000e+00> : vector<16x16xf32>
    %105 = tpu.matmul %104, %79, %cst_27 {dimension_numbers = #tpu.dot_dimension_numbers<[1], [1], [0], [0], [0, 0, 1, 0], [], []>} : vector<16x32xf32>, vector<16x32xf32>, vector<16x16xf32> -> vector<16x16xf32>
    %cst_28 = arith.constant 0.353553385 : f32
    %106 = vector.broadcast %cst_28 : f32 to vector<16x16xf32>
    %107 = arith.mulf %105, %106 : vector<16x16xf32>
    %cst_29 = arith.constant -1.000000e+30 : f32
    %108 = vector.broadcast %cst_29 : f32 to vector<16x16xf32>
    %109 = arith.select %13, %107, %108 : vector<16x16xi1>, vector<16x16xf32>
    %cst_30 = arith.constant dense<0xFF800000> : vector<16xf32>
    %110 = vector.multi_reduction <maximumf>, %109, %cst_30 [1] : vector<16x16xf32> to vector<16xf32>
    %111 = vector.shape_cast %110 : vector<16xf32> to vector<16x1xf32>
    %112 = vector.broadcast %111 : vector<16x1xf32> to vector<16x16xf32>
    %113 = arith.subf %109, %112 : vector<16x16xf32>
    %114 = math.exp %113 : vector<16x16xf32>
    %cst_31 = arith.constant dense<0.000000e+00> : vector<16xf32>
    %115 = vector.multi_reduction <add>, %114, %cst_31 [1] : vector<16x16xf32> to vector<16xf32>
    %116 = vector.shape_cast %115 : vector<16xf32> to vector<16x1xf32>
    %117 = tpu.reciprocal %116 {approx = true} : vector<16x1xf32> -> vector<16x1xf32>
    %118 = vector.broadcast %117 : vector<16x1xf32> to vector<16x16xf32>
    %119 = arith.mulf %114, %118 : vector<16x16xf32>
    %120 = vector.broadcast %28 : vector<1x32xf32> to vector<16x32xf32>
    %121 = arith.mulf %80, %120 : vector<16x32xf32>
    %cst_32 = arith.constant dense<0.000000e+00> : vector<16x32xf32>
    %122 = tpu.matmul %119, %121, %cst_32 {dimension_numbers = #tpu.dot_dimension_numbers<[1], [0], [0], [1], [0, 0, 1, 1], [], []>} : vector<16x16xf32>, vector<16x32xf32>, vector<16x32xf32> -> vector<16x32xf32>
    %123 = arith.addf %102, %122 : vector<16x32xf32>
    %124 = vector.broadcast %35 : vector<1x32xf32> to vector<16x32xf32>
    %125 = arith.mulf %78, %124 : vector<16x32xf32>
    %cst_33 = arith.constant dense<0.000000e+00> : vector<16x16xf32>
    %126 = tpu.matmul %125, %79, %cst_33 {dimension_numbers = #tpu.dot_dimension_numbers<[1], [1], [0], [0], [0, 0, 1, 0], [], []>} : vector<16x32xf32>, vector<16x32xf32>, vector<16x16xf32> -> vector<16x16xf32>
    %cst_34 = arith.constant 0.353553385 : f32
    %127 = vector.broadcast %cst_34 : f32 to vector<16x16xf32>
    %128 = arith.mulf %126, %127 : vector<16x16xf32>
    %cst_35 = arith.constant -1.000000e+30 : f32
    %129 = vector.broadcast %cst_35 : f32 to vector<16x16xf32>
    %130 = arith.select %13, %128, %129 : vector<16x16xi1>, vector<16x16xf32>
    %cst_36 = arith.constant dense<0xFF800000> : vector<16xf32>
    %131 = vector.multi_reduction <maximumf>, %130, %cst_36 [1] : vector<16x16xf32> to vector<16xf32>
    %132 = vector.shape_cast %131 : vector<16xf32> to vector<16x1xf32>
    %133 = vector.broadcast %132 : vector<16x1xf32> to vector<16x16xf32>
    %134 = arith.subf %130, %133 : vector<16x16xf32>
    %135 = math.exp %134 : vector<16x16xf32>
    %cst_37 = arith.constant dense<0.000000e+00> : vector<16xf32>
    %136 = vector.multi_reduction <add>, %135, %cst_37 [1] : vector<16x16xf32> to vector<16xf32>
    %137 = vector.shape_cast %136 : vector<16xf32> to vector<16x1xf32>
    %138 = tpu.reciprocal %137 {approx = true} : vector<16x1xf32> -> vector<16x1xf32>
    %139 = vector.broadcast %138 : vector<16x1xf32> to vector<16x16xf32>
    %140 = arith.mulf %135, %139 : vector<16x16xf32>
    %141 = vector.broadcast %35 : vector<1x32xf32> to vector<16x32xf32>
    %142 = arith.mulf %80, %141 : vector<16x32xf32>
    %cst_38 = arith.constant dense<0.000000e+00> : vector<16x32xf32>
    %143 = tpu.matmul %140, %142, %cst_38 {dimension_numbers = #tpu.dot_dimension_numbers<[1], [0], [0], [1], [0, 0, 1, 1], [], []>} : vector<16x16xf32>, vector<16x32xf32>, vector<16x32xf32> -> vector<16x32xf32>
    %144 = arith.addf %123, %143 : vector<16x32xf32>
    %145 = vector.broadcast %42 : vector<1x32xf32> to vector<16x32xf32>
    %146 = arith.mulf %78, %145 : vector<16x32xf32>
    %cst_39 = arith.constant dense<0.000000e+00> : vector<16x16xf32>
    %147 = tpu.matmul %146, %79, %cst_39 {dimension_numbers = #tpu.dot_dimension_numbers<[1], [1], [0], [0], [0, 0, 1, 0], [], []>} : vector<16x32xf32>, vector<16x32xf32>, vector<16x16xf32> -> vector<16x16xf32>
    %cst_40 = arith.constant 0.353553385 : f32
    %148 = vector.broadcast %cst_40 : f32 to vector<16x16xf32>
    %149 = arith.mulf %147, %148 : vector<16x16xf32>
    %cst_41 = arith.constant -1.000000e+30 : f32
    %150 = vector.broadcast %cst_41 : f32 to vector<16x16xf32>
    %151 = arith.select %13, %149, %150 : vector<16x16xi1>, vector<16x16xf32>
    %cst_42 = arith.constant dense<0xFF800000> : vector<16xf32>
    %152 = vector.multi_reduction <maximumf>, %151, %cst_42 [1] : vector<16x16xf32> to vector<16xf32>
    %153 = vector.shape_cast %152 : vector<16xf32> to vector<16x1xf32>
    %154 = vector.broadcast %153 : vector<16x1xf32> to vector<16x16xf32>
    %155 = arith.subf %151, %154 : vector<16x16xf32>
    %156 = math.exp %155 : vector<16x16xf32>
    %cst_43 = arith.constant dense<0.000000e+00> : vector<16xf32>
    %157 = vector.multi_reduction <add>, %156, %cst_43 [1] : vector<16x16xf32> to vector<16xf32>
    %158 = vector.shape_cast %157 : vector<16xf32> to vector<16x1xf32>
    %159 = tpu.reciprocal %158 {approx = true} : vector<16x1xf32> -> vector<16x1xf32>
    %160 = vector.broadcast %159 : vector<16x1xf32> to vector<16x16xf32>
    %161 = arith.mulf %156, %160 : vector<16x16xf32>
    %162 = vector.broadcast %42 : vector<1x32xf32> to vector<16x32xf32>
    %163 = arith.mulf %80, %162 : vector<16x32xf32>
    %cst_44 = arith.constant dense<0.000000e+00> : vector<16x32xf32>
    %164 = tpu.matmul %161, %163, %cst_44 {dimension_numbers = #tpu.dot_dimension_numbers<[1], [0], [0], [1], [0, 0, 1, 1], [], []>} : vector<16x16xf32>, vector<16x32xf32>, vector<16x32xf32> -> vector<16x32xf32>
    %165 = arith.addf %144, %164 : vector<16x32xf32>
    %c0_45 = arith.constant 0 : index
    %c0_46 = arith.constant 0 : index
    %c0_47 = arith.constant 0 : index
    %166 = vector.load %arg5[%c0_45, %c0_46, %c0_47] : memref<2x32x32xf32, #tpu.memory_space<vmem>>, vector<1x32x32xf32>
    %167 = vector.shape_cast %166 : vector<1x32x32xf32> to vector<32x32xf32>
    %cst_48 = arith.constant dense<0.000000e+00> : vector<16x32xf32>
    %168 = tpu.matmul %165, %167, %cst_48 {dimension_numbers = #tpu.dot_dimension_numbers<[1], [0], [0], [1], [0, 0, 1, 1], [], []>} : vector<16x32xf32>, vector<32x32xf32>, vector<16x32xf32> -> vector<16x32xf32>
    %169 = arith.addf %0, %168 : vector<16x32xf32>
    %170 = vector.extract_strided_slice %44 {offsets = [4, 0], sizes = [1, 32], strides = [1, 1]} : vector<6x32xf32> to vector<1x32xf32>
    %171 = vector.shape_cast %170 : vector<1x32xf32> to vector<32xf32>
    %172 = vector.shape_cast %171 : vector<32xf32> to vector<1x32xf32>
    %173 = vector.broadcast %172 : vector<1x32xf32> to vector<16x32xf32>
    %174 = arith.addf %169, %173 : vector<16x32xf32>
    %175 = vector.extract_strided_slice %44 {offsets = [2, 0], sizes = [1, 32], strides = [1, 1]} : vector<6x32xf32> to vector<1x32xf32>
    %176 = vector.shape_cast %175 : vector<1x32xf32> to vector<32xf32>
    %177 = vector.extract_strided_slice %44 {offsets = [3, 0], sizes = [1, 32], strides = [1, 1]} : vector<6x32xf32> to vector<1x32xf32>
    %178 = vector.shape_cast %177 : vector<1x32xf32> to vector<32xf32>
    %cst_49 = arith.constant dense<0.000000e+00> : vector<16xf32>
    %179 = vector.multi_reduction <add>, %174, %cst_49 [1] : vector<16x32xf32> to vector<16xf32>
    %180 = vector.shape_cast %179 : vector<16xf32> to vector<16x1xf32>
    %cst_50 = arith.constant 3.200000e+01 : f32
    %181 = vector.broadcast %cst_50 : f32 to vector<16x1xf32>
    %182 = arith.divf %180, %181 : vector<16x1xf32>
    %183 = vector.broadcast %182 : vector<16x1xf32> to vector<16x32xf32>
    %184 = arith.subf %174, %183 : vector<16x32xf32>
    %185 = arith.mulf %184, %184 : vector<16x32xf32>
    %cst_51 = arith.constant dense<0.000000e+00> : vector<16xf32>
    %186 = vector.multi_reduction <add>, %185, %cst_51 [1] : vector<16x32xf32> to vector<16xf32>
    %187 = vector.shape_cast %186 : vector<16xf32> to vector<16x1xf32>
    %cst_52 = arith.constant 3.200000e+01 : f32
    %188 = vector.broadcast %cst_52 : f32 to vector<16x1xf32>
    %189 = arith.divf %187, %188 : vector<16x1xf32>
    %cst_53 = arith.constant 9.99999974E-6 : f32
    %190 = vector.broadcast %cst_53 : f32 to vector<16x1xf32>
    %191 = arith.addf %189, %190 : vector<16x1xf32>
    %192 = math.rsqrt %191 : vector<16x1xf32>
    %193 = vector.broadcast %192 : vector<16x1xf32> to vector<16x32xf32>
    %194 = arith.mulf %184, %193 : vector<16x32xf32>
    %195 = vector.shape_cast %176 : vector<32xf32> to vector<1x32xf32>
    %196 = vector.broadcast %195 : vector<1x32xf32> to vector<16x32xf32>
    %197 = arith.mulf %194, %196 : vector<16x32xf32>
    %198 = vector.shape_cast %178 : vector<32xf32> to vector<1x32xf32>
    %199 = vector.broadcast %198 : vector<1x32xf32> to vector<16x32xf32>
    %200 = arith.addf %197, %199 : vector<16x32xf32>
    %c0_54 = arith.constant 0 : index
    %c0_55 = arith.constant 0 : index
    %c0_56 = arith.constant 0 : index
    %201 = vector.load %arg6[%c0_54, %c0_55, %c0_56] : memref<2x32x128xf32, #tpu.memory_space<vmem>>, vector<1x32x128xf32>
    %202 = vector.shape_cast %201 : vector<1x32x128xf32> to vector<32x128xf32>
    %cst_57 = arith.constant dense<0.000000e+00> : vector<16x128xf32>
    %203 = tpu.matmul %200, %202, %cst_57 {dimension_numbers = #tpu.dot_dimension_numbers<[1], [0], [0], [1], [0, 0, 1, 1], [], []>} : vector<16x32xf32>, vector<32x128xf32>, vector<16x128xf32> -> vector<16x128xf32>
    %c0_58 = arith.constant 0 : index
    %c0_59 = arith.constant 0 : index
    %c0_60 = arith.constant 0 : index
    %204 = vector.load %arg7[%c0_58, %c0_59, %c0_60] : memref<2x1x128xf32, #tpu.memory_space<vmem>>, vector<1x1x128xf32>
    %205 = vector.shape_cast %204 : vector<1x1x128xf32> to vector<1x128xf32>
    %206 = vector.broadcast %205 : vector<1x128xf32> to vector<16x128xf32>
    %207 = arith.addf %203, %206 : vector<16x128xf32>
    %cst_61 = arith.constant 5.000000e-01 : f32
    %208 = vector.broadcast %cst_61 : f32 to vector<16x128xf32>
    %209 = arith.mulf %208, %207 : vector<16x128xf32>
    %cst_62 = arith.constant 4.471500e-02 : f32
    %210 = vector.broadcast %cst_62 : f32 to vector<16x128xf32>
    %211 = arith.mulf %210, %207 : vector<16x128xf32>
    %212 = arith.mulf %211, %207 : vector<16x128xf32>
    %213 = arith.mulf %212, %207 : vector<16x128xf32>
    %214 = arith.addf %207, %213 : vector<16x128xf32>
    %cst_63 = arith.constant 0.797884583 : f32
    %215 = vector.broadcast %cst_63 : f32 to vector<16x128xf32>
    %216 = arith.mulf %215, %214 : vector<16x128xf32>
    %217 = math.tanh %216 : vector<16x128xf32>
    %cst_64 = arith.constant 1.000000e+00 : f32
    %218 = vector.broadcast %cst_64 : f32 to vector<16x128xf32>
    %219 = arith.addf %218, %217 : vector<16x128xf32>
    %220 = arith.mulf %209, %219 : vector<16x128xf32>
    %c0_65 = arith.constant 0 : index
    %c0_66 = arith.constant 0 : index
    %c0_67 = arith.constant 0 : index
    %221 = vector.load %arg8[%c0_65, %c0_66, %c0_67] : memref<2x128x32xf32, #tpu.memory_space<vmem>>, vector<1x128x32xf32>
    %222 = vector.shape_cast %221 : vector<1x128x32xf32> to vector<128x32xf32>
    %cst_68 = arith.constant dense<0.000000e+00> : vector<16x32xf32>
    %223 = tpu.matmul %220, %222, %cst_68 {dimension_numbers = #tpu.dot_dimension_numbers<[1], [0], [0], [1], [0, 0, 1, 1], [], []>} : vector<16x128xf32>, vector<128x32xf32>, vector<16x32xf32> -> vector<16x32xf32>
    %224 = arith.addf %174, %223 : vector<16x32xf32>
    %225 = vector.extract_strided_slice %44 {offsets = [5, 0], sizes = [1, 32], strides = [1, 1]} : vector<6x32xf32> to vector<1x32xf32>
    %226 = vector.shape_cast %225 : vector<1x32xf32> to vector<32xf32>
    %227 = vector.shape_cast %226 : vector<32xf32> to vector<1x32xf32>
    %228 = vector.broadcast %227 : vector<1x32xf32> to vector<16x32xf32>
    %229 = arith.addf %224, %228 : vector<16x32xf32>
    %c1 = arith.constant 1 : index
    %c0_69 = arith.constant 0 : index
    %c0_70 = arith.constant 0 : index
    %230 = vector.load %arg2[%c1, %c0_69, %c0_70] : memref<2x6x32xf32, #tpu.memory_space<vmem>>, vector<1x6x32xf32>
    %231 = vector.shape_cast %230 : vector<1x6x32xf32> to vector<6x32xf32>
    %232 = vector.extract_strided_slice %231 {offsets = [0, 0], sizes = [1, 32], strides = [1, 1]} : vector<6x32xf32> to vector<1x32xf32>
    %233 = vector.shape_cast %232 : vector<1x32xf32> to vector<32xf32>
    %234 = vector.extract_strided_slice %231 {offsets = [1, 0], sizes = [1, 32], strides = [1, 1]} : vector<6x32xf32> to vector<1x32xf32>
    %235 = vector.shape_cast %234 : vector<1x32xf32> to vector<32xf32>
    %cst_71 = arith.constant dense<0.000000e+00> : vector<16xf32>
    %236 = vector.multi_reduction <add>, %229, %cst_71 [1] : vector<16x32xf32> to vector<16xf32>
    %237 = vector.shape_cast %236 : vector<16xf32> to vector<16x1xf32>
    %cst_72 = arith.constant 3.200000e+01 : f32
    %238 = vector.broadcast %cst_72 : f32 to vector<16x1xf32>
    %239 = arith.divf %237, %238 : vector<16x1xf32>
    %240 = vector.broadcast %239 : vector<16x1xf32> to vector<16x32xf32>
    %241 = arith.subf %229, %240 : vector<16x32xf32>
    %242 = arith.mulf %241, %241 : vector<16x32xf32>
    %cst_73 = arith.constant dense<0.000000e+00> : vector<16xf32>
    %243 = vector.multi_reduction <add>, %242, %cst_73 [1] : vector<16x32xf32> to vector<16xf32>
    %244 = vector.shape_cast %243 : vector<16xf32> to vector<16x1xf32>
    %cst_74 = arith.constant 3.200000e+01 : f32
    %245 = vector.broadcast %cst_74 : f32 to vector<16x1xf32>
    %246 = arith.divf %244, %245 : vector<16x1xf32>
    %cst_75 = arith.constant 9.99999974E-6 : f32
    %247 = vector.broadcast %cst_75 : f32 to vector<16x1xf32>
    %248 = arith.addf %246, %247 : vector<16x1xf32>
    %249 = math.rsqrt %248 : vector<16x1xf32>
    %250 = vector.broadcast %249 : vector<16x1xf32> to vector<16x32xf32>
    %251 = arith.mulf %241, %250 : vector<16x32xf32>
    %252 = vector.shape_cast %233 : vector<32xf32> to vector<1x32xf32>
    %253 = vector.broadcast %252 : vector<1x32xf32> to vector<16x32xf32>
    %254 = arith.mulf %251, %253 : vector<16x32xf32>
    %255 = vector.shape_cast %235 : vector<32xf32> to vector<1x32xf32>
    %256 = vector.broadcast %255 : vector<1x32xf32> to vector<16x32xf32>
    %257 = arith.addf %254, %256 : vector<16x32xf32>
    %c1_76 = arith.constant 1 : index
    %c0_77 = arith.constant 0 : index
    %c0_78 = arith.constant 0 : index
    %258 = vector.load %arg3[%c1_76, %c0_77, %c0_78] : memref<2x32x96xf32, #tpu.memory_space<vmem>>, vector<1x32x96xf32>
    %259 = vector.shape_cast %258 : vector<1x32x96xf32> to vector<32x96xf32>
    %cst_79 = arith.constant dense<0.000000e+00> : vector<16x96xf32>
    %260 = tpu.matmul %257, %259, %cst_79 {dimension_numbers = #tpu.dot_dimension_numbers<[1], [0], [0], [1], [0, 0, 1, 1], [], []>} : vector<16x32xf32>, vector<32x96xf32>, vector<16x96xf32> -> vector<16x96xf32>
    %c1_80 = arith.constant 1 : index
    %c0_81 = arith.constant 0 : index
    %c0_82 = arith.constant 0 : index
    %261 = vector.load %arg4[%c1_80, %c0_81, %c0_82] : memref<2x1x96xf32, #tpu.memory_space<vmem>>, vector<1x1x96xf32>
    %262 = vector.shape_cast %261 : vector<1x1x96xf32> to vector<1x96xf32>
    %263 = vector.broadcast %262 : vector<1x96xf32> to vector<16x96xf32>
    %264 = arith.addf %260, %263 : vector<16x96xf32>
    %265 = vector.extract_strided_slice %264 {offsets = [0, 0], sizes = [16, 32], strides = [1, 1]} : vector<16x96xf32> to vector<16x32xf32>
    %266 = vector.extract_strided_slice %264 {offsets = [0, 32], sizes = [16, 32], strides = [1, 1]} : vector<16x96xf32> to vector<16x32xf32>
    %267 = vector.extract_strided_slice %264 {offsets = [0, 64], sizes = [16, 32], strides = [1, 1]} : vector<16x96xf32> to vector<16x32xf32>
    %cst_83 = arith.constant 0.000000e+00 : f32
    %268 = vector.broadcast %cst_83 : f32 to vector<16x32xf32>
    %269 = vector.broadcast %21 : vector<1x32xf32> to vector<16x32xf32>
    %270 = arith.mulf %265, %269 : vector<16x32xf32>
    %cst_84 = arith.constant dense<0.000000e+00> : vector<16x16xf32>
    %271 = tpu.matmul %270, %266, %cst_84 {dimension_numbers = #tpu.dot_dimension_numbers<[1], [1], [0], [0], [0, 0, 1, 0], [], []>} : vector<16x32xf32>, vector<16x32xf32>, vector<16x16xf32> -> vector<16x16xf32>
    %cst_85 = arith.constant 0.353553385 : f32
    %272 = vector.broadcast %cst_85 : f32 to vector<16x16xf32>
    %273 = arith.mulf %271, %272 : vector<16x16xf32>
    %cst_86 = arith.constant -1.000000e+30 : f32
    %274 = vector.broadcast %cst_86 : f32 to vector<16x16xf32>
    %275 = arith.select %13, %273, %274 : vector<16x16xi1>, vector<16x16xf32>
    %cst_87 = arith.constant dense<0xFF800000> : vector<16xf32>
    %276 = vector.multi_reduction <maximumf>, %275, %cst_87 [1] : vector<16x16xf32> to vector<16xf32>
    %277 = vector.shape_cast %276 : vector<16xf32> to vector<16x1xf32>
    %278 = vector.broadcast %277 : vector<16x1xf32> to vector<16x16xf32>
    %279 = arith.subf %275, %278 : vector<16x16xf32>
    %280 = math.exp %279 : vector<16x16xf32>
    %cst_88 = arith.constant dense<0.000000e+00> : vector<16xf32>
    %281 = vector.multi_reduction <add>, %280, %cst_88 [1] : vector<16x16xf32> to vector<16xf32>
    %282 = vector.shape_cast %281 : vector<16xf32> to vector<16x1xf32>
    %283 = tpu.reciprocal %282 {approx = true} : vector<16x1xf32> -> vector<16x1xf32>
    %284 = vector.broadcast %283 : vector<16x1xf32> to vector<16x16xf32>
    %285 = arith.mulf %280, %284 : vector<16x16xf32>
    %286 = vector.broadcast %21 : vector<1x32xf32> to vector<16x32xf32>
    %287 = arith.mulf %267, %286 : vector<16x32xf32>
    %cst_89 = arith.constant dense<0.000000e+00> : vector<16x32xf32>
    %288 = tpu.matmul %285, %287, %cst_89 {dimension_numbers = #tpu.dot_dimension_numbers<[1], [0], [0], [1], [0, 0, 1, 1], [], []>} : vector<16x16xf32>, vector<16x32xf32>, vector<16x32xf32> -> vector<16x32xf32>
    %289 = arith.addf %268, %288 : vector<16x32xf32>
    %290 = vector.broadcast %28 : vector<1x32xf32> to vector<16x32xf32>
    %291 = arith.mulf %265, %290 : vector<16x32xf32>
    %cst_90 = arith.constant dense<0.000000e+00> : vector<16x16xf32>
    %292 = tpu.matmul %291, %266, %cst_90 {dimension_numbers = #tpu.dot_dimension_numbers<[1], [1], [0], [0], [0, 0, 1, 0], [], []>} : vector<16x32xf32>, vector<16x32xf32>, vector<16x16xf32> -> vector<16x16xf32>
    %cst_91 = arith.constant 0.353553385 : f32
    %293 = vector.broadcast %cst_91 : f32 to vector<16x16xf32>
    %294 = arith.mulf %292, %293 : vector<16x16xf32>
    %cst_92 = arith.constant -1.000000e+30 : f32
    %295 = vector.broadcast %cst_92 : f32 to vector<16x16xf32>
    %296 = arith.select %13, %294, %295 : vector<16x16xi1>, vector<16x16xf32>
    %cst_93 = arith.constant dense<0xFF800000> : vector<16xf32>
    %297 = vector.multi_reduction <maximumf>, %296, %cst_93 [1] : vector<16x16xf32> to vector<16xf32>
    %298 = vector.shape_cast %297 : vector<16xf32> to vector<16x1xf32>
    %299 = vector.broadcast %298 : vector<16x1xf32> to vector<16x16xf32>
    %300 = arith.subf %296, %299 : vector<16x16xf32>
    %301 = math.exp %300 : vector<16x16xf32>
    %cst_94 = arith.constant dense<0.000000e+00> : vector<16xf32>
    %302 = vector.multi_reduction <add>, %301, %cst_94 [1] : vector<16x16xf32> to vector<16xf32>
    %303 = vector.shape_cast %302 : vector<16xf32> to vector<16x1xf32>
    %304 = tpu.reciprocal %303 {approx = true} : vector<16x1xf32> -> vector<16x1xf32>
    %305 = vector.broadcast %304 : vector<16x1xf32> to vector<16x16xf32>
    %306 = arith.mulf %301, %305 : vector<16x16xf32>
    %307 = vector.broadcast %28 : vector<1x32xf32> to vector<16x32xf32>
    %308 = arith.mulf %267, %307 : vector<16x32xf32>
    %cst_95 = arith.constant dense<0.000000e+00> : vector<16x32xf32>
    %309 = tpu.matmul %306, %308, %cst_95 {dimension_numbers = #tpu.dot_dimension_numbers<[1], [0], [0], [1], [0, 0, 1, 1], [], []>} : vector<16x16xf32>, vector<16x32xf32>, vector<16x32xf32> -> vector<16x32xf32>
    %310 = arith.addf %289, %309 : vector<16x32xf32>
    %311 = vector.broadcast %35 : vector<1x32xf32> to vector<16x32xf32>
    %312 = arith.mulf %265, %311 : vector<16x32xf32>
    %cst_96 = arith.constant dense<0.000000e+00> : vector<16x16xf32>
    %313 = tpu.matmul %312, %266, %cst_96 {dimension_numbers = #tpu.dot_dimension_numbers<[1], [1], [0], [0], [0, 0, 1, 0], [], []>} : vector<16x32xf32>, vector<16x32xf32>, vector<16x16xf32> -> vector<16x16xf32>
    %cst_97 = arith.constant 0.353553385 : f32
    %314 = vector.broadcast %cst_97 : f32 to vector<16x16xf32>
    %315 = arith.mulf %313, %314 : vector<16x16xf32>
    %cst_98 = arith.constant -1.000000e+30 : f32
    %316 = vector.broadcast %cst_98 : f32 to vector<16x16xf32>
    %317 = arith.select %13, %315, %316 : vector<16x16xi1>, vector<16x16xf32>
    %cst_99 = arith.constant dense<0xFF800000> : vector<16xf32>
    %318 = vector.multi_reduction <maximumf>, %317, %cst_99 [1] : vector<16x16xf32> to vector<16xf32>
    %319 = vector.shape_cast %318 : vector<16xf32> to vector<16x1xf32>
    %320 = vector.broadcast %319 : vector<16x1xf32> to vector<16x16xf32>
    %321 = arith.subf %317, %320 : vector<16x16xf32>
    %322 = math.exp %321 : vector<16x16xf32>
    %cst_100 = arith.constant dense<0.000000e+00> : vector<16xf32>
    %323 = vector.multi_reduction <add>, %322, %cst_100 [1] : vector<16x16xf32> to vector<16xf32>
    %324 = vector.shape_cast %323 : vector<16xf32> to vector<16x1xf32>
    %325 = tpu.reciprocal %324 {approx = true} : vector<16x1xf32> -> vector<16x1xf32>
    %326 = vector.broadcast %325 : vector<16x1xf32> to vector<16x16xf32>
    %327 = arith.mulf %322, %326 : vector<16x16xf32>
    %328 = vector.broadcast %35 : vector<1x32xf32> to vector<16x32xf32>
    %329 = arith.mulf %267, %328 : vector<16x32xf32>
    %cst_101 = arith.constant dense<0.000000e+00> : vector<16x32xf32>
    %330 = tpu.matmul %327, %329, %cst_101 {dimension_numbers = #tpu.dot_dimension_numbers<[1], [0], [0], [1], [0, 0, 1, 1], [], []>} : vector<16x16xf32>, vector<16x32xf32>, vector<16x32xf32> -> vector<16x32xf32>
    %331 = arith.addf %310, %330 : vector<16x32xf32>
    %332 = vector.broadcast %42 : vector<1x32xf32> to vector<16x32xf32>
    %333 = arith.mulf %265, %332 : vector<16x32xf32>
    %cst_102 = arith.constant dense<0.000000e+00> : vector<16x16xf32>
    %334 = tpu.matmul %333, %266, %cst_102 {dimension_numbers = #tpu.dot_dimension_numbers<[1], [1], [0], [0], [0, 0, 1, 0], [], []>} : vector<16x32xf32>, vector<16x32xf32>, vector<16x16xf32> -> vector<16x16xf32>
    %cst_103 = arith.constant 0.353553385 : f32
    %335 = vector.broadcast %cst_103 : f32 to vector<16x16xf32>
    %336 = arith.mulf %334, %335 : vector<16x16xf32>
    %cst_104 = arith.constant -1.000000e+30 : f32
    %337 = vector.broadcast %cst_104 : f32 to vector<16x16xf32>
    %338 = arith.select %13, %336, %337 : vector<16x16xi1>, vector<16x16xf32>
    %cst_105 = arith.constant dense<0xFF800000> : vector<16xf32>
    %339 = vector.multi_reduction <maximumf>, %338, %cst_105 [1] : vector<16x16xf32> to vector<16xf32>
    %340 = vector.shape_cast %339 : vector<16xf32> to vector<16x1xf32>
    %341 = vector.broadcast %340 : vector<16x1xf32> to vector<16x16xf32>
    %342 = arith.subf %338, %341 : vector<16x16xf32>
    %343 = math.exp %342 : vector<16x16xf32>
    %cst_106 = arith.constant dense<0.000000e+00> : vector<16xf32>
    %344 = vector.multi_reduction <add>, %343, %cst_106 [1] : vector<16x16xf32> to vector<16xf32>
    %345 = vector.shape_cast %344 : vector<16xf32> to vector<16x1xf32>
    %346 = tpu.reciprocal %345 {approx = true} : vector<16x1xf32> -> vector<16x1xf32>
    %347 = vector.broadcast %346 : vector<16x1xf32> to vector<16x16xf32>
    %348 = arith.mulf %343, %347 : vector<16x16xf32>
    %349 = vector.broadcast %42 : vector<1x32xf32> to vector<16x32xf32>
    %350 = arith.mulf %267, %349 : vector<16x32xf32>
    %cst_107 = arith.constant dense<0.000000e+00> : vector<16x32xf32>
    %351 = tpu.matmul %348, %350, %cst_107 {dimension_numbers = #tpu.dot_dimension_numbers<[1], [0], [0], [1], [0, 0, 1, 1], [], []>} : vector<16x16xf32>, vector<16x32xf32>, vector<16x32xf32> -> vector<16x32xf32>
    %352 = arith.addf %331, %351 : vector<16x32xf32>
    %c1_108 = arith.constant 1 : index
    %c0_109 = arith.constant 0 : index
    %c0_110 = arith.constant 0 : index
    %353 = vector.load %arg5[%c1_108, %c0_109, %c0_110] : memref<2x32x32xf32, #tpu.memory_space<vmem>>, vector<1x32x32xf32>
    %354 = vector.shape_cast %353 : vector<1x32x32xf32> to vector<32x32xf32>
    %cst_111 = arith.constant dense<0.000000e+00> : vector<16x32xf32>
    %355 = tpu.matmul %352, %354, %cst_111 {dimension_numbers = #tpu.dot_dimension_numbers<[1], [0], [0], [1], [0, 0, 1, 1], [], []>} : vector<16x32xf32>, vector<32x32xf32>, vector<16x32xf32> -> vector<16x32xf32>
    %356 = arith.addf %229, %355 : vector<16x32xf32>
    %357 = vector.extract_strided_slice %231 {offsets = [4, 0], sizes = [1, 32], strides = [1, 1]} : vector<6x32xf32> to vector<1x32xf32>
    %358 = vector.shape_cast %357 : vector<1x32xf32> to vector<32xf32>
    %359 = vector.shape_cast %358 : vector<32xf32> to vector<1x32xf32>
    %360 = vector.broadcast %359 : vector<1x32xf32> to vector<16x32xf32>
    %361 = arith.addf %356, %360 : vector<16x32xf32>
    %362 = vector.extract_strided_slice %231 {offsets = [2, 0], sizes = [1, 32], strides = [1, 1]} : vector<6x32xf32> to vector<1x32xf32>
    %363 = vector.shape_cast %362 : vector<1x32xf32> to vector<32xf32>
    %364 = vector.extract_strided_slice %231 {offsets = [3, 0], sizes = [1, 32], strides = [1, 1]} : vector<6x32xf32> to vector<1x32xf32>
    %365 = vector.shape_cast %364 : vector<1x32xf32> to vector<32xf32>
    %cst_112 = arith.constant dense<0.000000e+00> : vector<16xf32>
    %366 = vector.multi_reduction <add>, %361, %cst_112 [1] : vector<16x32xf32> to vector<16xf32>
    %367 = vector.shape_cast %366 : vector<16xf32> to vector<16x1xf32>
    %cst_113 = arith.constant 3.200000e+01 : f32
    %368 = vector.broadcast %cst_113 : f32 to vector<16x1xf32>
    %369 = arith.divf %367, %368 : vector<16x1xf32>
    %370 = vector.broadcast %369 : vector<16x1xf32> to vector<16x32xf32>
    %371 = arith.subf %361, %370 : vector<16x32xf32>
    %372 = arith.mulf %371, %371 : vector<16x32xf32>
    %cst_114 = arith.constant dense<0.000000e+00> : vector<16xf32>
    %373 = vector.multi_reduction <add>, %372, %cst_114 [1] : vector<16x32xf32> to vector<16xf32>
    %374 = vector.shape_cast %373 : vector<16xf32> to vector<16x1xf32>
    %cst_115 = arith.constant 3.200000e+01 : f32
    %375 = vector.broadcast %cst_115 : f32 to vector<16x1xf32>
    %376 = arith.divf %374, %375 : vector<16x1xf32>
    %cst_116 = arith.constant 9.99999974E-6 : f32
    %377 = vector.broadcast %cst_116 : f32 to vector<16x1xf32>
    %378 = arith.addf %376, %377 : vector<16x1xf32>
    %379 = math.rsqrt %378 : vector<16x1xf32>
    %380 = vector.broadcast %379 : vector<16x1xf32> to vector<16x32xf32>
    %381 = arith.mulf %371, %380 : vector<16x32xf32>
    %382 = vector.shape_cast %363 : vector<32xf32> to vector<1x32xf32>
    %383 = vector.broadcast %382 : vector<1x32xf32> to vector<16x32xf32>
    %384 = arith.mulf %381, %383 : vector<16x32xf32>
    %385 = vector.shape_cast %365 : vector<32xf32> to vector<1x32xf32>
    %386 = vector.broadcast %385 : vector<1x32xf32> to vector<16x32xf32>
    %387 = arith.addf %384, %386 : vector<16x32xf32>
    %c1_117 = arith.constant 1 : index
    %c0_118 = arith.constant 0 : index
    %c0_119 = arith.constant 0 : index
    %388 = vector.load %arg6[%c1_117, %c0_118, %c0_119] : memref<2x32x128xf32, #tpu.memory_space<vmem>>, vector<1x32x128xf32>
    %389 = vector.shape_cast %388 : vector<1x32x128xf32> to vector<32x128xf32>
    %cst_120 = arith.constant dense<0.000000e+00> : vector<16x128xf32>
    %390 = tpu.matmul %387, %389, %cst_120 {dimension_numbers = #tpu.dot_dimension_numbers<[1], [0], [0], [1], [0, 0, 1, 1], [], []>} : vector<16x32xf32>, vector<32x128xf32>, vector<16x128xf32> -> vector<16x128xf32>
    %c1_121 = arith.constant 1 : index
    %c0_122 = arith.constant 0 : index
    %c0_123 = arith.constant 0 : index
    %391 = vector.load %arg7[%c1_121, %c0_122, %c0_123] : memref<2x1x128xf32, #tpu.memory_space<vmem>>, vector<1x1x128xf32>
    %392 = vector.shape_cast %391 : vector<1x1x128xf32> to vector<1x128xf32>
    %393 = vector.broadcast %392 : vector<1x128xf32> to vector<16x128xf32>
    %394 = arith.addf %390, %393 : vector<16x128xf32>
    %cst_124 = arith.constant 5.000000e-01 : f32
    %395 = vector.broadcast %cst_124 : f32 to vector<16x128xf32>
    %396 = arith.mulf %395, %394 : vector<16x128xf32>
    %cst_125 = arith.constant 4.471500e-02 : f32
    %397 = vector.broadcast %cst_125 : f32 to vector<16x128xf32>
    %398 = arith.mulf %397, %394 : vector<16x128xf32>
    %399 = arith.mulf %398, %394 : vector<16x128xf32>
    %400 = arith.mulf %399, %394 : vector<16x128xf32>
    %401 = arith.addf %394, %400 : vector<16x128xf32>
    %cst_126 = arith.constant 0.797884583 : f32
    %402 = vector.broadcast %cst_126 : f32 to vector<16x128xf32>
    %403 = arith.mulf %402, %401 : vector<16x128xf32>
    %404 = math.tanh %403 : vector<16x128xf32>
    %cst_127 = arith.constant 1.000000e+00 : f32
    %405 = vector.broadcast %cst_127 : f32 to vector<16x128xf32>
    %406 = arith.addf %405, %404 : vector<16x128xf32>
    %407 = arith.mulf %396, %406 : vector<16x128xf32>
    %c1_128 = arith.constant 1 : index
    %c0_129 = arith.constant 0 : index
    %c0_130 = arith.constant 0 : index
    %408 = vector.load %arg8[%c1_128, %c0_129, %c0_130] : memref<2x128x32xf32, #tpu.memory_space<vmem>>, vector<1x128x32xf32>
    %409 = vector.shape_cast %408 : vector<1x128x32xf32> to vector<128x32xf32>
    %cst_131 = arith.constant dense<0.000000e+00> : vector<16x32xf32>
    %410 = tpu.matmul %407, %409, %cst_131 {dimension_numbers = #tpu.dot_dimension_numbers<[1], [0], [0], [1], [0, 0, 1, 1], [], []>} : vector<16x128xf32>, vector<128x32xf32>, vector<16x32xf32> -> vector<16x32xf32>
    %411 = arith.addf %361, %410 : vector<16x32xf32>
    %412 = vector.extract_strided_slice %231 {offsets = [5, 0], sizes = [1, 32], strides = [1, 1]} : vector<6x32xf32> to vector<1x32xf32>
    %413 = vector.shape_cast %412 : vector<1x32xf32> to vector<32xf32>
    %414 = vector.shape_cast %413 : vector<32xf32> to vector<1x32xf32>
    %415 = vector.broadcast %414 : vector<1x32xf32> to vector<16x32xf32>
    %416 = arith.addf %411, %415 : vector<16x32xf32>
    %c0_132 = arith.constant 0 : index
    %c0_133 = arith.constant 0 : index
    %417 = vector.load %arg9[%c0_132, %c0_133] : memref<2x32xf32, #tpu.memory_space<vmem>>, vector<2x32xf32>
    %418 = vector.extract_strided_slice %417 {offsets = [0, 0], sizes = [1, 32], strides = [1, 1]} : vector<2x32xf32> to vector<1x32xf32>
    %419 = vector.shape_cast %418 : vector<1x32xf32> to vector<32xf32>
    %420 = vector.extract_strided_slice %417 {offsets = [1, 0], sizes = [1, 32], strides = [1, 1]} : vector<2x32xf32> to vector<1x32xf32>
    %421 = vector.shape_cast %420 : vector<1x32xf32> to vector<32xf32>
    %cst_134 = arith.constant dense<0.000000e+00> : vector<16xf32>
    %422 = vector.multi_reduction <add>, %416, %cst_134 [1] : vector<16x32xf32> to vector<16xf32>
    %423 = vector.shape_cast %422 : vector<16xf32> to vector<16x1xf32>
    %cst_135 = arith.constant 3.200000e+01 : f32
    %424 = vector.broadcast %cst_135 : f32 to vector<16x1xf32>
    %425 = arith.divf %423, %424 : vector<16x1xf32>
    %426 = vector.broadcast %425 : vector<16x1xf32> to vector<16x32xf32>
    %427 = arith.subf %416, %426 : vector<16x32xf32>
    %428 = arith.mulf %427, %427 : vector<16x32xf32>
    %cst_136 = arith.constant dense<0.000000e+00> : vector<16xf32>
    %429 = vector.multi_reduction <add>, %428, %cst_136 [1] : vector<16x32xf32> to vector<16xf32>
    %430 = vector.shape_cast %429 : vector<16xf32> to vector<16x1xf32>
    %cst_137 = arith.constant 3.200000e+01 : f32
    %431 = vector.broadcast %cst_137 : f32 to vector<16x1xf32>
    %432 = arith.divf %430, %431 : vector<16x1xf32>
    %cst_138 = arith.constant 9.99999974E-6 : f32
    %433 = vector.broadcast %cst_138 : f32 to vector<16x1xf32>
    %434 = arith.addf %432, %433 : vector<16x1xf32>
    %435 = math.rsqrt %434 : vector<16x1xf32>
    %436 = vector.broadcast %435 : vector<16x1xf32> to vector<16x32xf32>
    %437 = arith.mulf %427, %436 : vector<16x32xf32>
    %438 = vector.shape_cast %419 : vector<32xf32> to vector<1x32xf32>
    %439 = vector.broadcast %438 : vector<1x32xf32> to vector<16x32xf32>
    %440 = arith.mulf %437, %439 : vector<16x32xf32>
    %441 = vector.shape_cast %421 : vector<32xf32> to vector<1x32xf32>
    %442 = vector.broadcast %441 : vector<1x32xf32> to vector<16x32xf32>
    %443 = arith.addf %440, %442 : vector<16x32xf32>
    %444 = tpu.iota {dimensions = array<i32: 0>} : vector<2x16xi32>
    %445 = tpu.iota {dimensions = array<i32: 1>} : vector<2x16xi32>
    %c3_i32_139 = arith.constant 3 : i32
    %446 = vector.broadcast %c3_i32_139 : i32 to vector<2x16xi32>
    %447 = arith.shrsi %445, %446 : vector<2x16xi32>
    %448 = arith.cmpi eq, %444, %447 : vector<2x16xi32>
    %449 = arith.extui %448 : vector<2x16xi1> to vector<2x16xi32>
    %450 = arith.sitofp %449 : vector<2x16xi32> to vector<2x16xf32>
    %cst_140 = arith.constant 1.250000e-01 : f32
    %451 = vector.broadcast %cst_140 : f32 to vector<2x16xf32>
    %452 = arith.mulf %450, %451 : vector<2x16xf32>
    %cst_141 = arith.constant dense<0.000000e+00> : vector<2x32xf32>
    %453 = tpu.matmul %452, %443, %cst_141 {dimension_numbers = #tpu.dot_dimension_numbers<[1], [0], [0], [1], [0, 0, 1, 1], [], []>} : vector<2x16xf32>, vector<16x32xf32>, vector<2x32xf32> -> vector<2x32xf32>
    %c0_142 = arith.constant 0 : index
    %c0_143 = arith.constant 0 : index
    %454 = vector.load %arg10[%c0_142, %c0_143] : memref<32x128xf32, #tpu.memory_space<vmem>>, vector<32x128xf32>
    %cst_144 = arith.constant dense<0.000000e+00> : vector<2x128xf32>
    %455 = tpu.matmul %453, %454, %cst_144 {dimension_numbers = #tpu.dot_dimension_numbers<[1], [0], [0], [1], [0, 0, 1, 1], [], []>} : vector<2x32xf32>, vector<32x128xf32>, vector<2x128xf32> -> vector<2x128xf32>
    %c0_145 = arith.constant 0 : index
    %c0_146 = arith.constant 0 : index
    %456 = vector.load %arg11[%c0_145, %c0_146] : memref<1x128xf32, #tpu.memory_space<vmem>>, vector<1x128xf32>
    %457 = vector.broadcast %456 : vector<1x128xf32> to vector<2x128xf32>
    %458 = arith.addf %455, %457 : vector<2x128xf32>
    %459 = vector.shape_cast %458 : vector<2x128xf32> to vector<1x2x128xf32>
    %c0_147 = arith.constant 0 : index
    %c0_148 = arith.constant 0 : index
    %c0_149 = arith.constant 0 : index
    %460 = vector.load %arg12[%c0_147, %c0_148, %c0_149] : memref<1x2x128xf32, #tpu.memory_space<vmem>>, vector<1x2x128xf32>
    tpu.vector_store %arg12[%c0_147, %c0_148, %c0_149], %459 {strides = array<i32>} : memref<1x2x128xf32, #tpu.memory_space<vmem>>, vector<1x2x128xf32>,
    return
  }
  func.func @transform_0(%arg0: i32) -> (i32, i32) {
    %c0_i32 = arith.constant 0 : i32
    %c0_i32_0 = arith.constant 0 : i32
    return %arg0, %c0_i32 : i32, i32
  }
  func.func @transform_1(%arg0: i32) -> (i32, i32, i32) {
    %c0_i32 = arith.constant 0 : i32
    %c0_i32_0 = arith.constant 0 : i32
    %c0_i32_1 = arith.constant 0 : i32
    %c0_i32_2 = arith.constant 0 : i32
    return %c0_i32, %c0_i32_0, %c0_i32_1 : i32, i32, i32
  }
  func.func @transform_2(%arg0: i32) -> (i32, i32, i32) {
    %c0_i32 = arith.constant 0 : i32
    %c0_i32_0 = arith.constant 0 : i32
    %c0_i32_1 = arith.constant 0 : i32
    %c0_i32_2 = arith.constant 0 : i32
    return %c0_i32, %c0_i32_0, %c0_i32_1 : i32, i32, i32
  }
  func.func @transform_3(%arg0: i32) -> (i32, i32, i32) {
    %c0_i32 = arith.constant 0 : i32
    %c0_i32_0 = arith.constant 0 : i32
    %c0_i32_1 = arith.constant 0 : i32
    %c0_i32_2 = arith.constant 0 : i32
    return %c0_i32, %c0_i32_0, %c0_i32_1 : i32, i32, i32
  }
  func.func @transform_4(%arg0: i32) -> (i32, i32, i32) {
    %c0_i32 = arith.constant 0 : i32
    %c0_i32_0 = arith.constant 0 : i32
    %c0_i32_1 = arith.constant 0 : i32
    %c0_i32_2 = arith.constant 0 : i32
    return %c0_i32, %c0_i32_0, %c0_i32_1 : i32, i32, i32
  }
  func.func @transform_5(%arg0: i32) -> (i32, i32, i32) {
    %c0_i32 = arith.constant 0 : i32
    %c0_i32_0 = arith.constant 0 : i32
    %c0_i32_1 = arith.constant 0 : i32
    %c0_i32_2 = arith.constant 0 : i32
    return %c0_i32, %c0_i32_0, %c0_i32_1 : i32, i32, i32
  }
  func.func @transform_6(%arg0: i32) -> (i32, i32, i32) {
    %c0_i32 = arith.constant 0 : i32
    %c0_i32_0 = arith.constant 0 : i32
    %c0_i32_1 = arith.constant 0 : i32
    %c0_i32_2 = arith.constant 0 : i32
    return %c0_i32, %c0_i32_0, %c0_i32_1 : i32, i32, i32
  }
  func.func @transform_7(%arg0: i32) -> (i32, i32, i32) {
    %c0_i32 = arith.constant 0 : i32
    %c0_i32_0 = arith.constant 0 : i32
    %c0_i32_1 = arith.constant 0 : i32
    %c0_i32_2 = arith.constant 0 : i32
    return %c0_i32, %c0_i32_0, %c0_i32_1 : i32, i32, i32
  }
  func.func @transform_8(%arg0: i32) -> (i32, i32) {
    %c0_i32 = arith.constant 0 : i32
    %c0_i32_0 = arith.constant 0 : i32
    %c0_i32_1 = arith.constant 0 : i32
    return %c0_i32, %c0_i32_0 : i32, i32
  }
  func.func @transform_9(%arg0: i32) -> (i32, i32) {
    %c0_i32 = arith.constant 0 : i32
    %c0_i32_0 = arith.constant 0 : i32
    %c0_i32_1 = arith.constant 0 : i32
    return %c0_i32, %c0_i32_0 : i32, i32
  }
  func.func @transform_10(%arg0: i32) -> (i32, i32) {
    %c0_i32 = arith.constant 0 : i32
    %c0_i32_0 = arith.constant 0 : i32
    %c0_i32_1 = arith.constant 0 : i32
    return %c0_i32, %c0_i32_0 : i32, i32
  }
  func.func @transform_11(%arg0: i32) -> (i32, i32, i32) {
    %c0_i32 = arith.constant 0 : i32
    %c0_i32_0 = arith.constant 0 : i32
    %c0_i32_1 = arith.constant 0 : i32
    return %arg0, %c0_i32, %c0_i32_0 : i32, i32, i32
  }
}

</mosaic_0001>

<bundles_post_ra>
// kernel: tpu_custom_call.1
= control target key start
LH: loop header
LB: loop body
LE: loop exit
PB: predicated region body
PF: predicated region fallthrough
CT: control target
= control target key end

     0   :  { %s5103_s0 = inlined_call_operand.vmem [shape: f32[32,32], index: 0, kind: input, shape index: {}]   ;;  %s5104_s1 = inlined_call_operand.vmem [shape: f32[2,6,32], index: 1, kind: input, shape index: {}]   ;;  %s5105_s2 = inlined_call_operand.vmem [shape: f32[2,32,96], index: 2, kind: input, shape index: {}]   ;;  %s5106_s3 = inlined_call_operand.vmem [shape: f32[2,1,96], index: 3, kind: input, shape index: {}]   ;;  %s5107_s4 = inlined_call_operand.vmem [shape: f32[2,32,32], index: 4, kind: input, shape index: {}]   ;;  %s5108_s5 = inlined_call_operand.vmem [shape: f32[2,32,128], index: 5, kind: input, shape index: {}]   ;;  %s5109_s6 = inlined_call_operand.vmem [shape: f32[2,1,128], index: 6, kind: input, shape index: {}]   ;;  %s5110_s7 = inlined_call_operand.vmem [shape: f32[2,128,32], index: 7, kind: input, shape index: {}]   ;;  %s5111_s8 = inlined_call_operand.vmem [shape: f32[2,32], index: 8, kind: input, shape index: {}]   ;;  %s5112_s9 = inlined_call_operand.vmem [shape: f32[32,128], index: 9, kind: input, shape index: {}]   ;;  %s5113_s10 = inlined_call_operand.vmem [shape: f32[1,128], index: 10, kind: input, shape index: {}]   ;;  %s5114_s11 = inlined_call_operand.hbm [shape: f32[2,2,128], index: 11, kind: output, shape index: {}]  }
   0x1   :  { %5118 = sst [smem:[#allocation5_spill]] %s5103_s0 }
   0x2   :  { %16 = vsyncpa [#allocation3], 0 }
   0x3   :  { %18 = vsyncpa [#allocation3 + $0x1], 0  ;;  %s4349_s17 = smov 0   ;;  %s4351_s18 = smov 0  }
   0x4   :  { %s4353_s19 = smov 0   ;;  %s4355_s20 = smov 0  }
   0x5 LB: > { %s4370_s21 = sadd.s32 4294967295, %s4281_s20   ;;  %s3296_s22 = sadd.s32 4294967294, %s4281_s20   ;;  %s4281_s20 = sphi %s4355_s20, %s5133_s20   ;;  %s4277_s19 = sphi %s4353_s19, %s5132_s19   ;;  %s4273_s18 = sphi %s4351_s18, %s5131_s18   ;;  %s4269_s17 = sphi %s4349_s17, %s5130_s17  }
   0x6   : > { %s4374_s23 = sadd.s32 1, %s4281_s20   ;;  %s267_s24 = sadd.s32 1, %s4277_s19 }
   0x7   : > { %s264_s25 = ssub.s32 %s4281_s20, %s4374_s23  ;;  %p277_p0 = scmp.ne.s32.totalorder %s4277_s19, %s4273_s18 }
   0x8   : > { %p265_p1 = scmp.eq.s32.totalorder %s264_s25, 0  ;;  %p278_p2 = scmp.eq.s32.totalorder %s4370_s21, 1 }
   0x9   : > { %p283_p3 = scmp.ne.s32.totalorder %s4273_s18, %s4269_s17  ;;  %p284_p4 = scmp.eq.s32.totalorder %s3296_s22, 1 }
   0xa   : > { %s4385_s26 = scalar_select %p265_p1, %s4277_s19, %s267_s24  }
   0xb   : > { %p4387_p5 = por %p278_p2, %p277_p0  ;;  %p4391_p6 = por %p284_p4, %p283_p3 }
   0xc   : > { %p3299_p7 = scmp.ge.s32.totalorder %s4281_s20, 1  ;;  %p341_p8 = scmp.lt.s32.totalorder %s4281_s20, 3 }
   0xe   : > { %p342_p9 = pnand %p3299_p7, %p341_p8 }
   0xf   : > { %s3301_s29 = sshll.u32 (!%p342_p9), %s4370_s21, 1  ;;  %vm427_vm0 = vcmask (!%p342_p9), 261120   ;;  %s5121_s0 = sld [smem:[#allocation5_spill]] (!%p342_p9)  ;;  %v467_v14 = vld [vmem:[%s5105_s2] sm:$0xff] (!%p342_p9)  ;;  %v468_v15 = vld [vmem:[%s5105_s2 + $0x8] sm:$0xff] (!%p342_p9)  ;;  %v469_v16 = vld [vmem:[%s5105_s2 + $0x10] sm:$0xff] (!%p342_p9)  ;;  %v389_v22 = vlaneseq (!%p342_p9) }
  0x10   : > { %345 = sbr.rel (%p342_p9) target bundleno = 6231 (0x1857), region = 64  ;;  %p382_p10 = scmp.lt.s32.totalorder (!%p342_p9), %s3301_s29, 3  ;;  %v3820_v17 = vpack.c.bf16 (!%p342_p9), %v468_v15, %v467_v14  ;;  %v470_v18 = vld [vmem:[%s5105_s2 + $0x18] sm:$0xff] (!%p342_p9)  ;;  %v4433_v29 = vld [vmem:[%s5104_s1] sm:$0x3f] (!%p342_p9)  ;;  %v4283_v46 = vmov (!%p342_p9), 0.0   ;;  %vm4482_vm8 = vmpackc.low (!%p342_p9), %vm427_vm0, %vm427_vm0 }
  0x11   : > { %v3824_v19 = vpack.c.bf16 (!%p342_p9), %v470_v18, %v469_v16  ;;  %v4425_v26 = vshrl.u32 (!%p342_p9), %v389_v22, 7  ;;  %v4444_v41 = vand.u32 (!%p342_p9), 127, %v389_v22  ;;  %v3307_v42 = vld [vmem:[%s5106_s3] ss:$0 sm:$0xff] (!%p342_p9)  ;;  %s5117_s22 = smov (!%p342_p9), 96   ;;  %s5115_s24 = smov (!%p342_p9), 64  }
  0x12   : > { %3821 = vmatprep.subr.bf16.mxu1 (!%p342_p9), %v3820_v17  ;;  %vm656_vm14 = vcmask (!%p342_p9), 130048   ;;  %s5129_s16 = smov (!%p342_p9), 64   ;;  %s378_s25 = sand.u32 (!%p342_p9), 1, %s4273_s18  }
  0x13   : > { %3823 = vmatpush3.bf16.msra.mxu1 (!%p342_p9), %v3820_v17  ;;  %v4428_v28 = vsub.s32 (!%p342_p9), 0, %v4425_v26  ;;  %v4436_v30 = vsub.s32 (!%p342_p9), 1, %v4425_v26  ;;  %vm411_vm1 = vcmp.ge.s32.totalorder (!%p342_p9), %v4444_v41, 8  ;;  %vm412_vm2 = vcmp.lt.s32.totalorder (!%p342_p9), %v4444_v41, 16  ;;  %s3407_s13 = sshll.u32 (!%p342_p9), %s4370_s21, 5  ;;  %s4288_s21 = smov (!%p342_p9), [#allocation2]  }
  0x14   : > { %3825 = vmatprep.subr.bf16.mxu1 (!%p342_p9), %v3824_v19  ;;  %vm407_vm3 = vcmp.lt.s32.totalorder (!%p342_p9), %v4444_v41, 8  ;;  %vm413_vm4 = vmand (!%p342_p9), %vm411_vm1, %vm412_vm2  ;;  %vm416_vm5 = vcmp.ge.s32.totalorder (!%p342_p9), %v4444_v41, 16  ;;  %vm417_vm6 = vcmp.lt.s32.totalorder (!%p342_p9), %v4444_v41, 24  ;;  %v391_v63 = vadd.s32 (!%p342_p9), 8, %v4425_v26 }
  0x15   : > { %v458_v31 = vrot.slane (!%p342_p9), %v4433_v29, %v4428_v28  ;;  %v464_v34 = vrot.slane (!%p342_p9), %v4433_v29, %v4436_v30  ;;  %v4455_v47 = vsel (!%p342_p9), %vm407_vm3, 1.0, %v4283_v46  ;;  %v4458_v48 = vsel (!%p342_p9), %vm413_vm4, 1.0, %v4283_v46  ;;  %vm418_vm7 = vmand (!%p342_p9), %vm416_vm5, %vm417_vm6 }
  0x16   : > { %v4476_v53 = vsel (!%p342_p9), %vm418_vm7, 1.0, %v4283_v46  ;;  %vm421_vm1 = vcmp.ge.s32.totalorder (!%p342_p9), %v4444_v41, 24  ;;  %vm422_vm2 = vcmp.lt.s32.totalorder (!%p342_p9), %v4444_v41, 32  ;;  %vm4287_vm4 = vmmov (!%p342_p9), 0  }
  0x17   : > { %s5135_s29 = smov (!%p382_p10, %s3301_s29), 3  ;;  %3827 = vmatpush3.bf16.msra.mxu1 %v3824_v19  ;;  %vm423_vm3 = vmand %vm421_vm1, %vm422_vm2 }
  0x18   : > { %s3302_s30 = sshll.u32 %s5135_s29, 3  ;;  %s3300_s29 = sshll.u32 %s378_s25, 1 }
  0x19   : > { %s385_s14 = scalar_lea.vmem %s5121_s0, %s3302_s30  ;;  %s3224_s0 = scalar_lea.sflag [#allocation3], %s378_s25 }
  0x1a   : > { %v4401_v0 = vld [vmem:[%s385_s14] sm:$0xff]  ;;  %v4403_v1 = vld [vmem:[%s385_s14 + $0x8] sm:$0xff]  ;;  %s380_s14 = scalar_lea.vmem [#allocation2], %s3300_s29  ;;  %s4223_s29 = sshll.u32 %s4288_s21, 4  ;;  %s4224_s29 = int_to_ptr.vmem [resolvable:$false] %s4223_s29 }
  0x1b   : > { %v428_v2 = vsel %vm427_vm0, %v4401_v0, 0.0  ;;  %v431_v3 = vsel %vm427_vm0, %v4403_v1, 0.0  ;;  %s3237_s15 = sshll.u32 %s380_s14, 4  ;;  %s4225_s12 = scalar_lea.vmem %s4224_s29, 64  ;;  %s5063_s15 = int_to_ptr.vmem [resolvable:$true] %s3237_s15 }
  0x1c   : > { %429 = vadd.xlane.f32.xlu0 %v428_v2  ;;  %v394_v2 = vshra.s32 %v4425_v26, 3  ;;  %s4219_s30 = scalar_lea.vmem %s5063_s15, 32  ;;  %p4226_p0 = scmp.lt.s32.totalorder %s5063_s15, %s4224_s29 }
  0x1d   : > { %p4220_p11 = scmp.ne.s32.totalorder %s5063_s15, %s4219_s30  ;;  %p4227_p1 = scmp.lt.s32.totalorder %s4225_s12, %s4219_s30 }
  0x1f   : > { %p4221_p12 = pnand %p4220_p11, %p4387_p5  ;;  %p4228_p2 = por %p4227_p1, %p4226_p0 }
  0x20   : > { %432 = vadd.xlane.f32.xlu0 %v431_v3  ;;  %v396_v3 = vand.u32 7, %v4425_v26 }
  0x21   : > { %p4222_p13 = pneg %p4221_p12 }
  0x23   : > { %p4229_p3 = pnand %p4228_p2, %p4222_p13 }
  0xa9   : > { %v430_v4 = vpop.xlane.xlu0 %429 }
  0xaa   : > { %v435_v5 = vmul.f32 0.03125, %v430_v4  ;;  %v4522_v4 = vshra.s32 %v4444_v41, 3 }
  0xac   : > { %v437_v6 = vsub.f32 %v4401_v0, %v435_v5  ;;  %v399_v5 = vand.u32 7, %v4444_v41  ;;  %vm400_vm9 = vcmp.eq.s32.totalorder %v394_v2, %v4522_v4  ;;  %vm3061_vm5 = vcmp.eq.s32.totalorder %v4425_v26, %v4522_v4 }
  0xad   : > { %v433_v7 = vpop.xlane.xlu0 %432 }
  0xae   : > { %v436_v8 = vmul.f32 0.03125, %v433_v7  ;;  %v439_v9 = vmul.f32 %v437_v6, %v437_v6  ;;  %v397_v7 = vand.u32 7, %v391_v63  ;;  %vm402_vm10 = vcmp.le.s32.totalorder %v399_v5, %v396_v3 }
  0xaf   : > { %vm4527_vm13 = vmand %vm400_vm9, %vm402_vm10 }
  0xb0   : > { %v438_v10 = vsub.f32 %v4403_v1, %v436_v8  ;;  %v441_v11 = vsel %vm427_vm0, %v439_v9, 0.0  ;;  %vm403_vm12 = vcmp.le.s32.totalorder %v399_v5, %v397_v7 }
  0xb1   : > { %442 = vadd.xlane.f32.xlu1 %v441_v11 }
  0xb2   : > { %v440_v12 = vmul.f32 %v438_v10, %v438_v10 }
  0xb4   : > { %v444_v13 = vsel %vm427_vm0, %v440_v12, 0.0 }
  0xb5   : > { %445 = vadd.xlane.f32.xlu1 %v444_v13 }
 0x13e   : > { %v443_v20 = vpop.xlane.xlu1 %442 }
 0x13f   : > { %v447_v21 = vmul.f32 0.03125, %v443_v20 }
 0x141   : > { %v449_v23 = vadd.f32 1e-05, %v447_v21 }
 0x142   : > { %v446_v24 = vpop.xlane.xlu1 %445 }
 0x143   : > { %4127 = vrsqrt.f32 %v449_v23  ;;  %v448_v25 = vmul.f32 0.03125, %v446_v24 }
 0x145   : > { %v450_v27 = vadd.f32 1e-05, %v448_v25 }
 0x147   : > { %4129 = vrsqrt.f32 %v450_v27 }
 0x14d   : > { %v4128_v32 = vpop.eup %4127 }
 0x14e   : > { %v453_v33 = vmul.f32 %v4128_v32, %v437_v6  ;;  %v395_v6 = vshra.s32 %v391_v63, 3 }
 0x150   : > { %v459_v35 = vmul.f32 %v458_v31, %v453_v33  ;;  %vm401_vm11 = vcmp.eq.s32.totalorder %v395_v6, %v4522_v4  ;;  %v3141_v4 = vld [vmem:[%s5112_s9 + $0x18] sm:$0xff] }
 0x151   : > { %v4130_v36 = vpop.eup %4129  ;;  %vm4531_vm15 = vmand %vm401_vm11, %vm403_vm12 }
 0x152   : > { %v454_v37 = vmul.f32 %v4130_v36, %v438_v10  ;;  %v465_v38 = vadd.f32 %v464_v34, %v459_v35 }
 0x154   : > { %v460_v39 = vmul.f32 %v458_v31, %v454_v37  ;;  %3562 = vmatprep.mubr.msk.f32.mxu1 %vm427_vm0, %v465_v38 }
 0x156   : > { %v466_v40 = vadd.f32 %v464_v34, %v460_v39 }
 0x158   : > { %3563 = vmatmul.mubr.msk.f32.vlgmr.msra.gmra.mrb[0].mxu1 %vm427_vm0, %v466_v40 }
 0x22b   : > { %v3564_v43 = vpop.f32.mrb[0].mxu1 }
 0x22c   : > { %v4452_v44 = vadd.f32 %v3564_v43, %v3307_v42  ;;  %v550_v45 = vpop.f32.mrb[1].mxu1 }
 0x22d   : > { %v4460_v49 = vadd.f32 %v3307_v42, %v550_v45 }
 0x22e   : > { %v560_v59 = vmul.f32 %v4455_v47, %v4452_v44  ;;  %v686_v60 = vmul.f32 %v4458_v48, %v4452_v44  ;;  %v979_v62 = vmul.f32 %v4476_v53, %v4452_v44 }
 0x22f   : > { %v4077_v50 = vpack.i.bf16 %v4452_v44, %v4460_v49  ;;  %v559_v51 = vmul.f32 %v4455_v47, %v4460_v49  ;;  %v685_v52 = vmul.f32 %v4458_v48, %v4460_v49  ;;  %v978_v61 = vmul.f32 %v4476_v53, %v4460_v49 }
 0x231   : > { %4078 = vrot.lane.b32.xlu0 %v4077_v50, %s5117_s22  ;;  %3569 = vmatprep.mubr.msk.f32.mxu1 %vm427_vm0, %v559_v51 }
 0x232   : > { %3576 = vmatprep.mubr.msk.f32.mxu0 %vm427_vm0, %v685_v52 }
 0x235   : > { %795 = vrot.lane.b32.xlu0 %v4458_v48, %s5115_s24 }
 0x239   : > { %1088 = vrot.lane.b32.xlu0 %v4476_v53, %s5115_s24 }
 0x2a3   : > { %v4079_v54 = vpop.permute.xlu0 %4078 }
 0x2a4   : > { %v4081_v55 = vunpack.i.h.bf16 %v4079_v54  ;;  %v4080_v56 = vunpack.i.l.bf16 %v4079_v54 }
 0x2a6   : > { %v4486_v58 = vpack.c.bf16 %v4081_v55, %v4080_v56 }
 0x2a7   : > { %v4561_v6 = vpop.permute.xlu0 %795 }
 0x2a8   : > { %3830 = vmatprep.subr.msk.bf16.mxu1 %vm4482_vm8, %v4486_v58  ;;  %3836 = vmatprep.subr.msk.bf16.mxu0 %vm4482_vm8, %v4486_v58 }
 0x2a9   : > { %3833 = vmatpush3.bf16.xpose.msk.msra.mxu1 %vm4482_vm8, %v4486_v58  ;;  %3839 = vmatpush3.bf16.xpose.msk.msra.mxu0 %vm4482_vm8, %v4486_v58 }
 0x2aa   : > { %3850 = vmatprep.subr.msk.bf16.mxu0 %vm4482_vm8, %v4486_v58 }
 0x2b0   : > { %3570 = vmatmul.mubr.msk.f32.vlgmr.msra.gmra.mrb[2].mxu1 %vm427_vm0, %v560_v59  ;;  %3577 = vmatmul.mubr.msk.f32.vlgmr.msra.gmra.mrb[0].mxu0 %vm427_vm0, %v686_v60 }
 0x2b1   : > { %3853 = vmatpush3.bf16.xpose.msk.msra.mxu0 %vm4482_vm8, %v4486_v58  ;;  %3597 = vmatprep.mubr.msk.f32.mxu0 %vm427_vm0, %v978_v61 }
 0x2b8   : > { %3598 = vmatmul.mubr.msk.f32.vlgmr.msra.gmra.mrb[2].mxu0 %vm427_vm0, %v979_v62 }
 0x383   : > { %v3571_v8 = vpop.f32.mrb[2].mxu1  ;;  %v3578_v9 = vpop.f32.mrb[0].mxu0 }
 0x384   : > { %v643_v10 = vpop.f32.mrb[3].mxu1  ;;  %v759_v11 = vpop.f32.mrb[1].mxu0  ;;  %v769_v13 = vmul.f32 0.35355338, %v3578_v9  ;;  %v653_v23 = vmul.f32 0.35355338, %v3571_v8 }
 0x385   : > { %v768_v14 = vmul.f32 0.35355338, %v759_v11  ;;  %v652_v18 = vmul.f32 0.35355338, %v643_v10 }
 0x386   : > { %v771_v19 = vsel %vm4531_vm15, %v769_v13, -1e+30  ;;  %v655_v31 = vsel %vm4531_vm15, %v653_v23, -1e+30 }
 0x387   : > { %v770_v16 = vsel %vm4527_vm13, %v768_v14, -1e+30  ;;  %v775_v22 = vsel %vm656_vm14, %v771_v19, -inf  ;;  %v654_v24 = vsel %vm4527_vm13, %v652_v18, -1e+30  ;;  %v660_v32 = vsel %vm656_vm14, %v655_v31, -inf }
 0x388   : > { %v772_v17 = vsel %vm656_vm14, %v770_v16, -inf  ;;  %v657_v25 = vsel %vm656_vm14, %v654_v24, -inf }
 0x389   : > { %773 = vmax.xlane.f32.xlu1 %v772_v17  ;;  %v4572_v17 = vpop.permute.xlu0 %1088 }
 0x38a   : > { %v1091_v18 = vmul.f32 %v4572_v17, %v4460_v49 }
 0x38b   : > { %v3599_v20 = vpop.f32.mrb[2].mxu0 }
 0x38c   : > { %v1052_v21 = vpop.f32.mrb[3].mxu0  ;;  %v1062_v33 = vmul.f32 0.35355338, %v3599_v20 }
 0x38d   : > { %776 = vmax.xlane.f32.xlu1 %v775_v22  ;;  %v1061_v27 = vmul.f32 0.35355338, %v1052_v21 }
 0x38e   : > { %v1064_v36 = vsel %vm4531_vm15, %v1062_v33, -1e+30 }
 0x38f   : > { %v1063_v34 = vsel %vm4527_vm13, %v1061_v27, -1e+30  ;;  %v1068_v37 = vsel %vm656_vm14, %v1064_v36, -inf }
 0x390   : > { %v1065_v35 = vsel %vm656_vm14, %v1063_v34, -inf }
 0x391   : > { %658 = vmax.xlane.f32.xlu1 %v657_v25 }
 0x395   : > { %661 = vmax.xlane.f32.xlu1 %v660_v32  ;;  %v799_v32 = vmul.f32 %v4561_v6, %v4452_v44 }
 0x399   : > { %1066 = vmax.xlane.f32.xlu1 %v1065_v35 }
 0x39d   : > { %1069 = vmax.xlane.f32.xlu1 %v1068_v37 }
 0x3ae   : > { %680 = vrot.lane.b32.xlu1 %v4455_v47, %s5115_s24 }
 0x416   : > { %v774_v38 = vpop.xlane.xlu1 %773 }
 0x417   : > { %v778_v45 = vsub.f32 %v770_v16, %v774_v38 }
 0x419   : > { %v780_v52 = vmul.f32 1.442695, %v778_v45 }
 0x41a   : > { %v777_v39 = vpop.xlane.xlu1 %776 }
 0x41b   : > { %v779_v40 = vsub.f32 %v771_v19, %v777_v39  ;;  %v1092_v19 = vmul.f32 %v4572_v17, %v4452_v44 }
 0x41d   : > { %v782_v42 = vmul.f32 1.442695, %v779_v40 }
 0x41e   : > { %v659_v43 = vpop.xlane.xlu1 %658 }
 0x41f   : > { %4131 = vpow2.f32 %v782_v42  ;;  %v663_v54 = vsub.f32 %v654_v24, %v659_v43  ;;  %v4092_v24 = vpack.i.bf16 %v1092_v19, %v1091_v18 }
 0x421   : > { %v665_v60 = vmul.f32 1.442695, %v663_v54 }
 0x422   : > { %v662_v50 = vpop.xlane.xlu1 %661 }
 0x423   : > { %v664_v51 = vsub.f32 %v655_v31, %v662_v50  ;;  %v798_v31 = vmul.f32 %v4561_v6, %v4460_v49 }
 0x425   : > { %v667_v55 = vmul.f32 1.442695, %v664_v51  ;;  %v4082_v33 = vpack.i.bf16 %v799_v32, %v798_v31 }
 0x426   : > { %v1067_v56 = vpop.xlane.xlu1 %1066 }
 0x427   : > { %4133 = vpow2.f32 %v667_v55  ;;  %v1071_v2 = vsub.f32 %v1063_v34, %v1067_v56 }
 0x428   : > { %4135 = vpow2.f32 %v780_v52 }
 0x429   : > { %v4555_v59 = vpop.eup %4131  ;;  %4137 = vpow2.f32 %v665_v60  ;;  %v1073_v7 = vmul.f32 1.442695, %v1071_v2 }
 0x42a   : > { %v1070_v61 = vpop.xlane.xlu1 %1069  ;;  %v787_v62 = vsel %vm656_vm14, %v4555_v59, 0.0 }
 0x42b   : > { %v1072_v63 = vsub.f32 %v1064_v36, %v1070_v61  ;;  %788 = vadd.xlane.f32.xlu1 %v787_v62 }
 0x42d   : > { %v1075_v3 = vmul.f32 1.442695, %v1072_v63 }
 0x42e   : > { %v4565_v10 = vpop.permute.xlu1 %680 }
 0x42f   : > { %4139 = vpow2.f32 %v1075_v3  ;;  %v683_v11 = vmul.f32 %v4565_v10, %v4460_v49  ;;  %v684_v13 = vmul.f32 %v4565_v10, %v4452_v44 }
 0x430   : > { %4141 = vpow2.f32 %v1073_v7 }
 0x431   : > { %v4559_v5 = vpop.eup %4133  ;;  %v4087_v21 = vpack.i.bf16 %v684_v13, %v683_v11 }
 0x432   : > { %v672_v8 = vsel %vm656_vm14, %v4559_v5, 0.0  ;;  %v4136_v9 = vpop.eup %4135 }
 0x433   : > { %673 = vadd.xlane.f32.xlu0 %v672_v8  ;;  %v784_v14 = vsel %vm656_vm14, %v4136_v9, 0.0  ;;  %v4138_v16 = vpop.eup %4137 }
 0x434   : > { %v669_v20 = vsel %vm656_vm14, %v4138_v16, 0.0 }
 0x437   : > { %785 = vadd.xlane.f32.xlu0 %v784_v14 }
 0x439   : > { %v4579_v22 = vpop.eup %4139 }
 0x43a   : > { %v1080_v23 = vsel %vm656_vm14, %v4579_v22, 0.0  ;;  %v4142_v25 = vpop.eup %4141 }
 0x43b   : > { %670 = vadd.xlane.f32.xlu0 %v669_v20  ;;  %v1077_v27 = vsel %vm656_vm14, %v4142_v25, 0.0 }
 0x43c   : > { %4088 = vrot.lane.b32.xlu1 %v4087_v21, %s5115_s24 }
 0x43f   : > { %1081 = vadd.xlane.f32.xlu0 %v1080_v23 }
 0x440   : > { %4093 = vrot.lane.b32.xlu1 %v4092_v24, %s5115_s24 }
 0x443   : > { %1078 = vadd.xlane.f32.xlu0 %v1077_v27 }
 0x459   : > { %4083 = vrot.lane.b32.xlu0 %v4082_v33, %s5115_s24 }
 0x4b8   : > { %v789_v37 = vpop.xlane.xlu1 %788 }
 0x4bc   : > { %v4089_v40 = vpop.permute.xlu1 %4088 }
 0x4bd   : > { %v4091_v50 = vunpack.i.h.bf16 %v4089_v40  ;;  %v4090_v51 = vunpack.i.l.bf16 %v4089_v40 }
 0x4bf   : > { %v3844_v62 = vpack.c.bf16 %v4091_v50, %v4090_v51  ;;  %v1390_v50 = vld [vmem:[%s5107_s4] sm:$0xff]  ;;  %v1391_v51 = vld [vmem:[%s5107_s4 + $0x8] sm:$0xff] }
 0x4c0   : > { %v674_v34 = vpop.xlane.xlu0 %673  ;;  %v4094_v55 = vpop.permute.xlu1 %4093 }
 0x4c1   : > { %v4096_v63 = vunpack.i.h.bf16 %v4094_v55  ;;  %v4095_v2 = vunpack.i.l.bf16 %v4094_v55 }
 0x4c3   : > { %v3854_v8 = vpack.c.bf16 %v4096_v63, %v4095_v2 }
 0x4c4   : > { %v786_v35 = vpop.xlane.xlu0 %785 }
 0x4c5   : > { %4143 = vrcp.f32 %v786_v35 }
 0x4c6   : > { %4145 = vrcp.f32 %v789_v37 }
 0x4c8   : > { %v671_v36 = vpop.xlane.xlu0 %670 }
 0x4c9   : > { %4147 = vrcp.f32 %v671_v36 }
 0x4ca   : > { %4149 = vrcp.f32 %v674_v34 }
 0x4cc   : > { %v1082_v38 = vpop.xlane.xlu0 %1081 }
 0x4cf   : > { %v4144_v39 = vpop.eup %4143 }
 0x4d0   : > { %v1079_v42 = vpop.xlane.xlu0 %1078  ;;  %v792_v43 = vmul.f32 %v4144_v39, %v4136_v9  ;;  %v4146_v60 = vpop.eup %4145 }
 0x4d1   : > { %4151 = vrcp.f32 %v1079_v42  ;;  %v793_v3 = vmul.f32 %v4146_v60, %v4555_v59 }
 0x4d2   : > { %3583 = vmatprep.mubr.msk.f32.mxu1 %vm656_vm14, %v792_v43  ;;  %4153 = vrcp.f32 %v1082_v38 }
 0x4d3   : > { %v4148_v61 = vpop.eup %4147 }
 0x4d4   : > { %v4084_v45 = vpop.permute.xlu0 %4083  ;;  %v677_v7 = vmul.f32 %v4148_v61, %v4138_v16  ;;  %v4150_v9 = vpop.eup %4149  ;;  %v4604_v16 = vsel %vm423_vm3, 1.0, %v4283_v46 }
 0x4d5   : > { %v4086_v52 = vunpack.i.h.bf16 %v4084_v45  ;;  %v4085_v54 = vunpack.i.l.bf16 %v4084_v45  ;;  %v678_v13 = vmul.f32 %v4150_v9, %v4559_v5  ;;  %v1184_v41 = vmul.f32 %v4604_v16, %v4460_v49 }
 0x4d6   : > { %v1185_v18 = vmul.f32 %v4604_v16, %v4452_v44 }
 0x4d7   : > { %v3840_v56 = vpack.c.bf16 %v4086_v52, %v4085_v54  ;;  %v1392_v52 = vld [vmem:[%s5107_s4 + $0x10] sm:$0xff]  ;;  %v3868_v54 = vpack.c.bf16 %v1391_v51, %v1390_v50 }
 0x4d9   : > { %3841 = vmatprep.subr.bf16.mxu1 %v3840_v56  ;;  %3869 = vmatprep.subr.bf16.mxu0 %v3868_v54 }
 0x4da   : > { %3843 = vmatpush3.bf16.msra.mxu1 %v3840_v56  ;;  %3871 = vmatpush3.bf16.msra.mxu0 %v3868_v54 }
 0x4db   : > { %3845 = vmatprep.subr.bf16.mxu1 %v3844_v62  ;;  %v4152_v11 = vpop.eup %4151 }
 0x4dc   : > { %v1085_v14 = vmul.f32 %v4152_v11, %v4142_v25  ;;  %v4154_v59 = vpop.eup %4153 }
 0x4dd   : > { %3584 = vmatmul.mubr.msk.f32.vlgmr.msra.gmra.mrb[4].mxu1 %vm656_vm14, %v793_v3  ;;  %v1086_v5 = vmul.f32 %v4154_v59, %v4579_v22 }
 0x4de   : > { %3847 = vmatpush3.bf16.msra.mxu1 %v3844_v62  ;;  %3590 = vmatprep.mubr.msk.f32.mxu1 %vm656_vm14, %v677_v7 }
 0x4df   : > { %3855 = vmatprep.subr.bf16.mxu1 %v3854_v8 }
 0x4e5   : > { %3591 = vmatmul.mubr.msk.f32.vlgmr.msra.gmra.mrb[4].mxu1 %vm656_vm14, %v678_v13  ;;  %v1479_v13 = vsub.s32 4, %v4425_v26 }
 0x4e6   : > { %3857 = vmatpush3.bf16.msra.mxu1 %v3854_v8  ;;  %3604 = vmatprep.mubr.msk.f32.mxu1 %vm656_vm14, %v1085_v14 }
 0x4e7   : > { %3860 = vmatprep.subr.msk.bf16.mxu1 %vm4482_vm8, %v4486_v58  ;;  %v1480_v14 = vrot.slane %v4433_v29, %v1479_v13 }
 0x4ed   : > { %3605 = vmatmul.mubr.msk.f32.vlgmr.msra.gmra.mrb[4].mxu1 %vm656_vm14, %v1086_v5 }
 0x4ee   : > { %3611 = vmatprep.mubr.msk.f32.mxu1 %vm427_vm0, %v1184_v41 }
 0x4ef   : > { %3863 = vmatpush3.bf16.xpose.msk.msra.mxu1 %vm4482_vm8, %v4486_v58 }
 0x4f6   : > { %3612 = vmatmul.mubr.msk.f32.vlgmr.msra.gmra.mrb[6].mxu1 %vm427_vm0, %v1185_v18 }
 0x5c9   : > { %v3613_v19 = vpop.f32.mrb[6].mxu1 }
 0x5ca   : > { %v1268_v20 = vmul.f32 0.35355338, %v3613_v19  ;;  %v1258_v21 = vpop.f32.mrb[7].mxu1 }
 0x5cb   : > { %v1267_v22 = vmul.f32 0.35355338, %v1258_v21 }
 0x5cc   : > { %v1270_v23 = vsel %vm4531_vm15, %v1268_v20, -1e+30 }
 0x5cd   : > { %v1274_v24 = vsel %vm656_vm14, %v1270_v23, -inf  ;;  %v1269_v25 = vsel %vm4527_vm13, %v1267_v22, -1e+30 }
 0x5ce   : > { %1275 = vmax.xlane.f32.xlu0 %v1274_v24  ;;  %v1271_v58 = vsel %vm656_vm14, %v1269_v25, -inf }
 0x5cf   : > { %1272 = vmax.xlane.f32.xlu1 %v1271_v58 }
 0x5e4   : > { %1294 = vrot.lane.b32.xlu0 %v4604_v16, %s5115_s24 }
 0x65b   : > { %v1276_v27 = vpop.xlane.xlu0 %1275 }
 0x65c   : > { %v1278_v31 = vsub.f32 %v1270_v23, %v1276_v27  ;;  %v1273_v32 = vpop.xlane.xlu1 %1272 }
 0x65d   : > { %v1277_v33 = vsub.f32 %v1269_v25, %v1273_v32 }
 0x65e   : > { %v1281_v34 = vmul.f32 1.442695, %v1278_v31 }
 0x65f   : > { %v1279_v35 = vmul.f32 1.442695, %v1277_v33  ;;  %v4627_v40 = vpop.permute.xlu0 %1294 }
 0x660   : > { %4155 = vpow2.f32 %v1281_v34  ;;  %v1297_v42 = vmul.f32 %v4627_v40, %v4460_v49  ;;  %v1298_v43 = vmul.f32 %v4627_v40, %v4452_v44  ;;  %v1393_v44 = vld [vmem:[%s5107_s4 + $0x18] sm:$0xff]  ;;  %v1521_v34 = vld [vmem:[%s5108_s5] sm:$0xff] }
 0x661   : > { %4157 = vpow2.f32 %v1279_v35  ;;  %v3872_v49 = vpack.c.bf16 %v1393_v44, %v1392_v52  ;;  %v1522_v35 = vld [vmem:[%s5108_s5 + $0x8] sm:$0xff] }
 0x662   : > { %v4097_v45 = vpack.i.bf16 %v1298_v43, %v1297_v42  ;;  %v1631_v42 = vld [vmem:[%s5110_s7] sm:$0xff]  ;;  %v1632_v43 = vld [vmem:[%s5110_s7 + $0x8] sm:$0xff] }
 0x663   : > { %3873 = vmatprep.subr.bf16.mxu0 %v3872_v49 }
 0x664   : > { %3875 = vmatpush3.bf16.msra.mxu0 %v3872_v49 }
 0x66a   : > { %v4156_v36 = vpop.eup %4155 }
 0x66b   : > { %v1286_v37 = vsel %vm656_vm14, %v4156_v36, 0.0  ;;  %v4158_v38 = vpop.eup %4157 }
 0x66c   : > { %1287 = vadd.xlane.f32.xlu1 %v1286_v37  ;;  %v1283_v39 = vsel %vm656_vm14, %v4158_v38, 0.0  ;;  %v1523_v37 = vld [vmem:[%s5108_s5 + $0x10] sm:$0xff] }
 0x670   : > { %1284 = vadd.xlane.f32.xlu1 %v1283_v39 }
 0x681   : > { %4098 = vrot.lane.b32.xlu1 %v4097_v45, %s5115_s24  ;;  %v3884_v45 = vpack.c.bf16 %v1632_v43, %v1631_v42  ;;  %s5128_s24 = smov 96  }
 0x6f9   : > { %v1288_v55 = vpop.xlane.xlu1 %1287 }
 0x6fa   : > { %4159 = vrcp.f32 %v1288_v55  ;;  %v1511_v55 = vsub.s32 2, %v4425_v26 }
 0x6fd   : > { %v1285_v56 = vpop.xlane.xlu1 %1284 }
 0x6fe   : > { %4161 = vrcp.f32 %v1285_v56  ;;  %v1517_v56 = vsub.s32 3, %v4425_v26 }
 0x701   : > { %v4099_v60 = vpop.permute.xlu1 %4098 }
 0x702   : > { %v4101_v61 = vunpack.i.h.bf16 %v4099_v60  ;;  %v4100_v62 = vunpack.i.l.bf16 %v4099_v60  ;;  %v1512_v60 = vrot.slane %v4433_v29, %v1511_v55 }
 0x704   : > { %v3864_v63 = vpack.c.bf16 %v4101_v61, %v4100_v62  ;;  %v4160_v2 = vpop.eup %4159 }
 0x705   : > { %v1292_v8 = vmul.f32 %v4160_v2, %v4156_v36  ;;  %v3876_v36 = vpack.c.bf16 %v1522_v35, %v1521_v34  ;;  %v1645_v35 = vld [vmem:[%s5110_s7 + $0x70] sm:$0xff] }
 0x706   : > { %3865 = vmatprep.subr.bf16.mxu1 %v3864_v63 }
 0x707   : > { %3867 = vmatpush3.bf16.msra.mxu1 %v3864_v63  ;;  %3877 = vmatprep.subr.bf16.mxu0 %v3876_v36  ;;  %v1518_v63 = vrot.slane %v4433_v29, %v1517_v56 }
 0x708   : > { %v4162_v3 = vpop.eup %4161  ;;  %3885 = vmatprep.subr.bf16.mxu1 %v3884_v45 }
 0x709   : > { %v1291_v7 = vmul.f32 %v4162_v3, %v4158_v38  ;;  %v1524_v38 = vld [vmem:[%s5108_s5 + $0x18] sm:$0xff] }
 0x70a   : > { %v3880_v39 = vpack.c.bf16 %v1524_v38, %v1523_v37  ;;  %v3336_v38 = vld [vmem:[%s5109_s6] ss:$0 sm:$0xff] }
 0x70b   : > { %3618 = vmatprep.mubr.msk.f32.mxu1 %vm656_vm14, %v1291_v7 }
 0x70c   : > { %3619 = vmatmul.mubr.msk.f32.vlgmr.msra.gmra.mrb[4].mxu1 %vm656_vm14, %v1292_v8 }
 0x70d   : > { %3887 = vmatpush3.bf16.msra.mxu1 %v3884_v45 }
 0x7df   : > { %v3620_v9 = vpop.f32.mrb[4].mxu1 }
 0x7e0   : > { %v1379_v11 = vpop.f32.mrb[5].mxu1 }
 0x7e1   : > { %3629 = vmatprep.mubr.msk.f32.mxu0 %vm427_vm0, %v1379_v11 }
 0x7e2   : > { %3630 = vmatmul.mubr.msk.f32.vlgmr.msra.gmra.mrb[4].mxu0 %vm427_vm0, %v3620_v9 }
 0x7e3   : > { %3879 = vmatpush3.bf16.msra.mxu0 %v3876_v36  ;;  %v1646_v36 = vld [vmem:[%s5110_s7 + $0x78] sm:$0xff] }
 0x7e4   : > { %3881 = vmatprep.subr.bf16.mxu0 %v3880_v39  ;;  %v3912_v37 = vpack.c.bf16 %v1646_v36, %v1645_v35  ;;  %v3340_v36 = vld [vmem:[%s5105_s2 + $0x20] sm:$0xff] }
 0x7e7   : > { %3883 = vmatpush3.bf16.msra.mxu0 %v3880_v39 }
 0x8b5   : > { %v3631_v59 = vpop.f32.mrb[4].mxu0 }
 0x8b6   : > { %v1476_v5 = vadd.f32 %v3631_v59, %v4403_v1  ;;  %v1466_v41 = vpop.f32.mrb[5].mxu0  ;;  %v1634_v59 = vld [vmem:[%s5110_s7 + $0x18] sm:$0xff] }
 0x8b7   : > { %v1475_v18 = vadd.f32 %v1466_v41, %v4401_v0  ;;  %v1635_v41 = vld [vmem:[%s5110_s7 + $0x20] sm:$0xff] }
 0x8b8   : > { %v4656_v19 = vadd.f32 %v1480_v14, %v1476_v5 }
 0x8b9   : > { %v4658_v20 = vadd.f32 %v1480_v14, %v1475_v18  ;;  %v1633_v14 = vld [vmem:[%s5110_s7 + $0x10] sm:$0xff]  ;;  %v1636_v18 = vld [vmem:[%s5110_s7 + $0x28] sm:$0xff] }
 0x8ba   : > { %v1486_v21 = vsel %vm427_vm0, %v4656_v19, 0.0  ;;  %v3888_v5 = vpack.c.bf16 %v1634_v59, %v1633_v14 }
 0x8bb   : > { %1487 = vadd.xlane.f32.xlu1 %v1486_v21  ;;  %v1483_v22 = vsel %vm427_vm0, %v4658_v20, 0.0  ;;  %v3892_v21 = vpack.c.bf16 %v1636_v18, %v1635_v41 }
 0x8bc   : > { %1484 = vadd.xlane.f32.xlu0 %v1483_v22  ;;  %3889 = vmatprep.subr.bf16.mxu1 %v3888_v5  ;;  %v1637_v22 = vld [vmem:[%s5110_s7 + $0x30] sm:$0xff] }
 0x8bd   : > { %3891 = vmatpush3.bf16.msra.mxu1 %v3888_v5  ;;  %v1726_v5 = vsub.s32 5, %v4425_v26  ;;  %v3140_v26 = vld [vmem:[%s5112_s9 + $0x10] sm:$0xff] }
 0x8be   : > { %3893 = vmatprep.subr.bf16.mxu1 %v3892_v21 }
 0x8bf   : > { %v1727_v18 = vrot.slane %v4433_v29, %v1726_v5 }
 0x8c1   : > { %3895 = vmatpush3.bf16.msra.mxu1 %v3892_v21 }
 0x948   : > { %v1488_v23 = vpop.xlane.xlu1 %1487 }
 0x949   : > { %v1490_v24 = vmul.f32 0.03125, %v1488_v23  ;;  %v1485_v25 = vpop.xlane.xlu0 %1484  ;;  %v1638_v23 = vld [vmem:[%s5110_s7 + $0x38] sm:$0xff] }
 0x94a   : > { %v1489_v58 = vmul.f32 0.03125, %v1485_v25  ;;  %v1639_v25 = vld [vmem:[%s5110_s7 + $0x40] sm:$0xff] }
 0x94b   : > { %v1492_v1 = vsub.f32 %v4656_v19, %v1490_v24  ;;  %v3896_v24 = vpack.c.bf16 %v1638_v23, %v1637_v22 }
 0x94c   : > { %v1491_v0 = vsub.f32 %v4658_v20, %v1489_v58  ;;  %v1640_v58 = vld [vmem:[%s5110_s7 + $0x48] sm:$0xff] }
 0x94d   : > { %v1494_v32 = vmul.f32 %v1492_v1, %v1492_v1  ;;  %3897 = vmatprep.subr.bf16.mxu1 %v3896_v24 }
 0x94e   : > { %v1493_v27 = vmul.f32 %v1491_v0, %v1491_v0  ;;  %3899 = vmatpush3.bf16.msra.mxu1 %v3896_v24 }
 0x94f   : > { %v1498_v33 = vsel %vm427_vm0, %v1494_v32, 0.0  ;;  %v1643_v32 = vld [vmem:[%s5110_s7 + $0x60] sm:$0xff] }
 0x950   : > { %v1495_v31 = vsel %vm427_vm0, %v1493_v27, 0.0  ;;  %v1642_v27 = vld [vmem:[%s5110_s7 + $0x58] sm:$0xff] }
 0x951   : > { %1496 = vadd.xlane.f32.xlu0 %v1495_v31 }
 0x955   : > { %1499 = vadd.xlane.f32.xlu0 %v1498_v33  ;;  %v1644_v33 = vld [vmem:[%s5110_s7 + $0x68] sm:$0xff] }
 0x956   : > { %v3908_v34 = vpack.c.bf16 %v1644_v33, %v1643_v32 }
 0x9de   : > { %v1497_v50 = vpop.xlane.xlu0 %1496 }
 0x9df   : > { %v1501_v51 = vmul.f32 0.03125, %v1497_v50 }
 0x9e1   : > { %v1503_v52 = vadd.f32 1e-05, %v1501_v51 }
 0x9e2   : > { %v1500_v54 = vpop.xlane.xlu0 %1499 }
 0x9e3   : > { %4163 = vrsqrt.f32 %v1503_v52  ;;  %v1502_v44 = vmul.f32 0.03125, %v1500_v54 }
 0x9e5   : > { %v1504_v49 = vadd.f32 1e-05, %v1502_v44 }
 0x9e7   : > { %4165 = vrsqrt.f32 %v1504_v49 }
 0x9ed   : > { %v4164_v61 = vpop.eup %4163 }
 0x9ee   : > { %v1507_v62 = vmul.f32 %v4164_v61, %v1491_v0  ;;  %v3900_v0 = vpack.c.bf16 %v1640_v58, %v1639_v25 }
 0x9f0   : > { %v1513_v2 = vmul.f32 %v1512_v60, %v1507_v62  ;;  %3901 = vmatprep.subr.bf16.mxu1 %v3900_v0 }
 0x9f1   : > { %v4166_v3 = vpop.eup %4165  ;;  %3903 = vmatpush3.bf16.msra.mxu1 %v3900_v0 }
 0x9f2   : > { %v1508_v7 = vmul.f32 %v4166_v3, %v1492_v1  ;;  %v1519_v8 = vadd.f32 %v1518_v63, %v1513_v2  ;;  %v1641_v1 = vld [vmem:[%s5110_s7 + $0x50] sm:$0xff] }
 0x9f3   : > { %v3904_v31 = vpack.c.bf16 %v1642_v27, %v1641_v1 }
 0x9f4   : > { %v1514_v9 = vmul.f32 %v1512_v60, %v1508_v7  ;;  %3640 = vmatprep.mubr.msk.f32.mxu0 %vm427_vm0, %v1519_v8 }
 0x9f5   : > { %3905 = vmatprep.subr.bf16.mxu1 %v3904_v31 }
 0x9f6   : > { %v1520_v11 = vadd.f32 %v1518_v63, %v1514_v9  ;;  %3907 = vmatpush3.bf16.msra.mxu1 %v3904_v31 }
 0x9f7   : > { %3909 = vmatprep.subr.bf16.mxu1 %v3908_v34 }
 0x9f8   : > { %3641 = vmatmul.mubr.msk.f32.vlgmr.msra.gmra.mrb[6].mxu0 %vm427_vm0, %v1520_v11 }
 0x9fa   : > { %3911 = vmatpush3.bf16.msra.mxu1 %v3908_v34 }
 0x9fb   : > { %3913 = vmatprep.subr.bf16.mxu1 %v3912_v37 }
 0x9fe   : > { %3915 = vmatpush3.bf16.msra.mxu1 %v3912_v37  ;;  %v3341_v37 = vld [vmem:[%s5105_s2 + $0x28] sm:$0xff] }
 0xacb   : > { %v3642_v39 = vpop.f32.mrb[6].mxu0 }
 0xacc   : > { %v1610_v42 = vadd.f32 %v3642_v39, %v3336_v38  ;;  %v1604_v43 = vpop.f32.mrb[7].mxu0  ;;  %v3342_v39 = vld [vmem:[%s5105_s2 + $0x30] sm:$0xff] }
 0xacd   : > { %v1605_v45 = vadd.f32 %v3336_v38, %v1604_v43  ;;  %v3916_v38 = vpack.c.bf16 %v3341_v37, %v3340_v36 }
 0xace   : > { %v1616_v50 = vmul.f32 0.044715, %v1610_v42  ;;  %v1614_v11 = vmul.f32 0.5, %v1610_v42 }
 0xacf   : > { %v1615_v51 = vmul.f32 0.044715, %v1605_v45  ;;  %v1613_v8 = vmul.f32 0.5, %v1605_v45  ;;  %3917 = vmatprep.subr.bf16.mxu0 %v3916_v38 }
 0xad0   : > { %v1618_v52 = vmul.f32 %v1616_v50, %v1610_v42  ;;  %3919 = vmatpush3.bf16.msra.mxu0 %v3916_v38 }
 0xad1   : > { %v1617_v54 = vmul.f32 %v1615_v51, %v1605_v45 }
 0xad2   : > { %v1620_v44 = vmul.f32 %v1618_v52, %v1610_v42 }
 0xad3   : > { %v1619_v49 = vmul.f32 %v1617_v54, %v1605_v45 }
 0xad4   : > { %v1622_v60 = vadd.f32 %v1620_v44, %v1610_v42  ;;  %v3343_v42 = vld [vmem:[%s5105_s2 + $0x38] sm:$0xff] }
 0xad5   : > { %v1621_v61 = vadd.f32 %v1619_v49, %v1605_v45  ;;  %v3920_v43 = vpack.c.bf16 %v3343_v42, %v3342_v39  ;;  %v4774_v49 = vld [vmem:[%s5104_s1 + $0x8] sm:$0x3f] }
 0xad6   : > { %v1624_v62 = vmul.f32 0.7978846, %v1622_v60  ;;  %v1761_v60 = vrot.slane %v4774_v49, %v4428_v28 }
 0xad7   : > { %v1623_v63 = vmul.f32 0.7978846, %v1621_v61  ;;  %3921 = vmatprep.subr.bf16.mxu0 %v3920_v43 }
 0xad8   : > { %4167 = vtanh.f32 %v1624_v62  ;;  %3923 = vmatpush3.bf16.msra.mxu0 %v3920_v43 }
 0xad9   : > { %4169 = vtanh.f32 %v1623_v63  ;;  %v1767_v63 = vrot.slane %v4774_v49, %v4436_v30 }
 0xae2   : > { %v4168_v2 = vpop.eup %4167 }
 0xae3   : > { %v4170_v3 = vpop.eup %4169  ;;  %v1628_v7 = vadd.f32 1.0, %v4168_v2 }
 0xae4   : > { %v1627_v9 = vadd.f32 1.0, %v4170_v3 }
 0xae5   : > { %v1630_v59 = vmul.f32 %v1628_v7, %v1614_v11 }
 0xae6   : > { %v1629_v14 = vmul.f32 %v1627_v9, %v1613_v8 }
 0xae8   : > { %3675 = vmatprep.mubr.f32.mxu1 %v1629_v14  ;;  %v3345_v14 = vld [vmem:[%s5106_s3 + $0x1] ss:$0 sm:$0xff] }
 0xae9   : > { %3676 = vmatmul.mubr.f32.vlgmr.msra.gmra.mrb[8].mxu1 %v1630_v59 }
 0xbbc   : > { %v3677_v41 = vpop.f32.mrb[8].mxu1 }
 0xbbd   : > { %v1713_v21 = vpop.f32.mrb[9].mxu1  ;;  %v1723_v22 = vadd.f32 %v3677_v41, %v4656_v19 }
 0xbbe   : > { %v1722_v23 = vadd.f32 %v1713_v21, %v4658_v20 }
 0xbbf   : > { %v4749_v25 = vadd.f32 %v1727_v18, %v1723_v22 }
 0xbc0   : > { %v4747_v24 = vadd.f32 %v1727_v18, %v1722_v23 }
 0xbc1   : > { %v1735_v1 = vsel %vm427_vm0, %v4749_v25, 0.0 }
 0xbc2   : > { %v1732_v58 = vsel %vm427_vm0, %v4747_v24, 0.0 }
 0xbc3   : > { %1733 = vadd.xlane.f32.xlu0 %v1732_v58 }
 0xbc7   : > { %1736 = vadd.xlane.f32.xlu0 %v1735_v1 }
 0xc50   : > { %v1734_v0 = vpop.xlane.xlu0 %1733 }
 0xc51   : > { %v1738_v27 = vmul.f32 0.03125, %v1734_v0 }
 0xc53   : > { %v1740_v29 = vsub.f32 %v4747_v24, %v1738_v27 }
 0xc54   : > { %v1737_v31 = vpop.xlane.xlu0 %1736 }
 0xc55   : > { %v1739_v19 = vmul.f32 0.03125, %v1737_v31  ;;  %v1742_v32 = vmul.f32 %v1740_v29, %v1740_v29 }
 0xc57   : > { %v1741_v20 = vsub.f32 %v4749_v25, %v1739_v19  ;;  %v1744_v33 = vsel %vm427_vm0, %v1742_v32, 0.0 }
 0xc58   : > { %1745 = vadd.xlane.f32.xlu1 %v1744_v33 }
 0xc59   : > { %v1743_v34 = vmul.f32 %v1741_v20, %v1741_v20 }
 0xc5b   : > { %v1747_v35 = vsel %vm427_vm0, %v1743_v34, 0.0 }
 0xc5c   : > { %1748 = vadd.xlane.f32.xlu0 %v1747_v35 }
 0xce5   : > { %v1746_v45 = vpop.xlane.xlu1 %1745 }
 0xce6   : > { %v1750_v50 = vmul.f32 0.03125, %v1746_v45 }
 0xce8   : > { %v1752_v51 = vadd.f32 1e-05, %v1750_v50 }
 0xce9   : > { %v1749_v52 = vpop.xlane.xlu0 %1748 }
 0xcea   : > { %4171 = vrsqrt.f32 %v1752_v51  ;;  %v1751_v54 = vmul.f32 0.03125, %v1749_v52 }
 0xcec   : > { %v1753_v44 = vadd.f32 1e-05, %v1751_v54 }
 0xcee   : > { %4173 = vrsqrt.f32 %v1753_v44 }
 0xcf4   : > { %v4172_v61 = vpop.eup %4171 }
 0xcf5   : > { %v1756_v62 = vmul.f32 %v4172_v61, %v1740_v29 }
 0xcf7   : > { %v1762_v2 = vmul.f32 %v1761_v60, %v1756_v62 }
 0xcf8   : > { %v4174_v3 = vpop.eup %4173 }
 0xcf9   : > { %v1757_v7 = vmul.f32 %v4174_v3, %v1741_v20  ;;  %v1768_v8 = vadd.f32 %v1767_v63, %v1762_v2 }
 0xcfb   : > { %v1763_v9 = vmul.f32 %v1761_v60, %v1757_v7  ;;  %3686 = vmatprep.mubr.msk.f32.mxu0 %vm427_vm0, %v1768_v8 }
 0xcfd   : > { %v1769_v11 = vadd.f32 %v1767_v63, %v1763_v9 }
 0xcff   : > { %3687 = vmatmul.mubr.msk.f32.vlgmr.msra.gmra.mrb[8].mxu0 %vm427_vm0, %v1769_v11 }
 0xdd2   : > { %v3688_v59 = vpop.f32.mrb[8].mxu0 }
 0xdd3   : > { %v1861_v41 = vadd.f32 %v3688_v59, %v3345_v14  ;;  %v1855_v18 = vpop.f32.mrb[9].mxu0 }
 0xdd4   : > { %v1856_v21 = vadd.f32 %v3345_v14, %v1855_v18 }
 0xdd5   : > { %v4791_v0 = vmul.f32 %v1861_v41, %v4561_v6  ;;  %v4799_v29 = vmul.f32 %v1861_v41, %v4572_v17  ;;  %v4805_v19 = vmul.f32 %v1861_v41, %v4627_v40  ;;  %v4814_v20 = vmul.f32 %v1861_v41, %v4565_v10 }
 0xdd6   : > { %v4102_v22 = vpack.i.bf16 %v1861_v41, %v1856_v21  ;;  %v1864_v23 = vmul.f32 %v4455_v47, %v1856_v21  ;;  %v2274_v58 = vmul.f32 %v4476_v53, %v1856_v21  ;;  %v4788_v1 = vmul.f32 %v1856_v21, %v4561_v6 }
 0xdd7   : > { %v4794_v27 = vmul.f32 %v1856_v21, %v4572_v17  ;;  %v4802_v31 = vmul.f32 %v1856_v21, %v4627_v40  ;;  %v4811_v32 = vmul.f32 %v1856_v21, %v4565_v10  ;;  %v1865_v10 = vmul.f32 %v4455_v47, %v1861_v41 }
 0xdd8   : > { %4103 = vrot.lane.b32.xlu1 %v4102_v22, %s5128_s24  ;;  %3693 = vmatprep.mubr.msk.f32.mxu0 %vm427_vm0, %v1864_v23  ;;  %v4107_v6 = vpack.i.bf16 %v4791_v0, %v4788_v1  ;;  %v2275_v38 = vmul.f32 %v4476_v53, %v1861_v41  ;;  %v1985_v39 = vmul.f32 %v4458_v48, %v1856_v21 }
 0xdd9   : > { %3721 = vmatprep.mubr.msk.f32.mxu1 %vm427_vm0, %v2274_v58  ;;  %v4117_v17 = vpack.i.bf16 %v4799_v29, %v4794_v27  ;;  %v4122_v33 = vpack.i.bf16 %v4805_v19, %v4802_v31  ;;  %v4112_v40 = vpack.i.bf16 %v4814_v20, %v4811_v32  ;;  %v2476_v42 = vmul.f32 %v4604_v16, %v1856_v21 }
 0xdda   : > { %v1986_v47 = vmul.f32 %v4458_v48, %v1861_v41  ;;  %v2477_v53 = vmul.f32 %v4604_v16, %v1861_v41 }
 0xe4a   : > { %v4104_v34 = vpop.permute.xlu1 %4103 }
 0xe4b   : > { %v4106_v35 = vunpack.i.h.bf16 %v4104_v34  ;;  %v4105_v36 = vunpack.i.l.bf16 %v4104_v34 }
 0xe4d   : > { %v3924_v37 = vpack.c.bf16 %v4106_v35, %v4105_v36 }
 0xe4f   : > { %3926 = vmatprep.subr.msk.bf16.mxu0 %vm4482_vm8, %v3924_v37  ;;  %3946 = vmatprep.subr.msk.bf16.mxu1 %vm4482_vm8, %v3924_v37 }
 0xe50   : > { %3929 = vmatpush3.bf16.xpose.msk.msra.mxu0 %vm4482_vm8, %v3924_v37  ;;  %3949 = vmatpush3.bf16.xpose.msk.msra.mxu1 %vm4482_vm8, %v3924_v37 }
 0xe51   : > { %3932 = vmatprep.subr.msk.bf16.mxu0 %vm4482_vm8, %v3924_v37  ;;  %3956 = vmatprep.subr.msk.bf16.mxu1 %vm4482_vm8, %v3924_v37 }
 0xe57   : > { %3694 = vmatmul.mubr.msk.f32.vlgmr.msra.gmra.mrb[10].mxu0 %vm427_vm0, %v1865_v10  ;;  %3722 = vmatmul.mubr.msk.f32.vlgmr.msra.gmra.mrb[10].mxu1 %vm427_vm0, %v2275_v38 }
 0xe58   : > { %3935 = vmatpush3.bf16.xpose.msk.msra.mxu0 %vm4482_vm8, %v3924_v37  ;;  %3700 = vmatprep.mubr.msk.f32.mxu0 %vm427_vm0, %v1985_v39 }
 0xe59   : > { %3959 = vmatpush3.bf16.xpose.msk.msra.mxu1 %vm4482_vm8, %v3924_v37  ;;  %3735 = vmatprep.mubr.msk.f32.mxu1 %vm427_vm0, %v2476_v42 }
 0xe5f   : > { %3701 = vmatmul.mubr.msk.f32.vlgmr.msra.gmra.mrb[12].mxu0 %vm427_vm0, %v1986_v47 }
 0xe60   : > { %3736 = vmatmul.mubr.msk.f32.vlgmr.msra.gmra.mrb[12].mxu1 %vm427_vm0, %v2477_v53 }
 0xf2a   : > { %v3695_v43 = vpop.f32.mrb[10].mxu0  ;;  %v3723_v45 = vpop.f32.mrb[10].mxu1 }
 0xf2b   : > { %v1948_v50 = vpop.f32.mrb[11].mxu0  ;;  %v2348_v51 = vpop.f32.mrb[11].mxu1  ;;  %v1958_v9 = vmul.f32 0.35355338, %v3695_v43  ;;  %v2358_v59 = vmul.f32 0.35355338, %v3723_v45 }
 0xf2c   : > { %v2357_v52 = vmul.f32 0.35355338, %v2348_v51  ;;  %v1957_v3 = vmul.f32 0.35355338, %v1948_v50 }
 0xf2d   : > { %v1960_v41 = vsel %vm4531_vm15, %v1958_v9, -1e+30  ;;  %v2360_v22 = vsel %vm4531_vm15, %v2358_v59, -1e+30 }
 0xf2e   : > { %v2359_v54 = vsel %vm4527_vm13, %v2357_v52, -1e+30  ;;  %v1959_v11 = vsel %vm4527_vm13, %v1957_v3, -1e+30  ;;  %v1964_v18 = vsel %vm656_vm14, %v1960_v41, -inf  ;;  %v2364_v23 = vsel %vm656_vm14, %v2360_v22, -inf }
 0xf2f   : > { %v2361_v57 = vsel %vm656_vm14, %v2359_v54, -inf  ;;  %v1961_v14 = vsel %vm656_vm14, %v1959_v11, -inf }
 0xf30   : > { %2362 = vmax.xlane.f32.xlu1 %v2361_v57 }
 0xf32   : > { %v3702_v44 = vpop.f32.mrb[12].mxu0 }
 0xf33   : > { %v3737_v60 = vpop.f32.mrb[12].mxu1  ;;  %v2059_v48 = vpop.f32.mrb[13].mxu0  ;;  %v2069_v61 = vmul.f32 0.35355338, %v3702_v44 }
 0xf34   : > { %v2068_v16 = vmul.f32 0.35355338, %v2059_v48  ;;  %v2550_v62 = vpop.f32.mrb[13].mxu1  ;;  %v2560_v58 = vmul.f32 0.35355338, %v3737_v60 }
 0xf35   : > { %v2071_v7 = vsel %vm4531_vm15, %v2069_v61, -1e+30  ;;  %v2559_v21 = vmul.f32 0.35355338, %v2550_v62 }
 0xf36   : > { %v4855_v63 = vsel %vm4527_vm13, %v2068_v16, -1e+30  ;;  %v2075_v8 = vsel %vm656_vm14, %v2071_v7, -inf  ;;  %v2562_v27 = vsel %vm4531_vm15, %v2560_v58, -1e+30 }
 0xf37   : > { %v2072_v2 = vsel %vm656_vm14, %v4855_v63, -inf  ;;  %v2561_v1 = vsel %vm4527_vm13, %v2559_v21, -1e+30  ;;  %v2566_v29 = vsel %vm656_vm14, %v2562_v27, -inf }
 0xf38   : > { %2073 = vmax.xlane.f32.xlu0 %v2072_v2  ;;  %v2563_v0 = vsel %vm656_vm14, %v2561_v1, -inf }
 0xf3c   : > { %2076 = vmax.xlane.f32.xlu0 %v2075_v8 }
 0xf40   : > { %1962 = vmax.xlane.f32.xlu0 %v1961_v14 }
 0xf41   : > { %4108 = vrot.lane.b32.xlu1 %v4107_v6, %s5129_s16 }
 0xf44   : > { %1965 = vmax.xlane.f32.xlu0 %v1964_v18 }
 0xf45   : > { %4118 = vrot.lane.b32.xlu1 %v4117_v17, %s5129_s16 }
 0xf48   : > { %2365 = vmax.xlane.f32.xlu0 %v2364_v23 }
 0xf49   : > { %4123 = vrot.lane.b32.xlu1 %v4122_v33, %s5129_s16 }
 0xf4c   : > { %2564 = vmax.xlane.f32.xlu0 %v2563_v0 }
 0xf50   : > { %2567 = vmax.xlane.f32.xlu0 %v2566_v29 }
 0xfbd   : > { %v2363_v6 = vpop.xlane.xlu1 %2362 }
 0xfbe   : > { %v2367_v42 = vsub.f32 %v2359_v54, %v2363_v6 }
 0xfc0   : > { %v2369_v45 = vmul.f32 1.442695, %v2367_v42 }
 0xfc1   : > { %v4109_v17 = vpop.permute.xlu1 %4108 }
 0xfc2   : > { %v4111_v34 = vunpack.i.h.bf16 %v4109_v17  ;;  %v4110_v35 = vunpack.i.l.bf16 %v4109_v17 }
 0xfc4   : > { %v3936_v12 = vpack.c.bf16 %v4111_v34, %v4110_v35 }
 0xfc5   : > { %v2074_v36 = vpop.xlane.xlu0 %2073  ;;  %v4119_v35 = vpop.permute.xlu1 %4118 }
 0xfc6   : > { %3937 = vmatprep.subr.bf16.mxu0 %v3936_v12  ;;  %v2078_v54 = vsub.f32 %v4855_v63, %v2074_v36 }
 0xfc7   : > { %3939 = vmatpush3.bf16.msra.mxu0 %v3936_v12 }
 0xfc8   : > { %v2080_v2 = vmul.f32 1.442695, %v2078_v54  ;;  %v3373_v54 = vld [vmem:[%s5107_s4 + $0x28] sm:$0xff] }
 0xfc9   : > { %v2077_v37 = vpop.xlane.xlu0 %2076  ;;  %v4124_v42 = vpop.permute.xlu1 %4123 }
 0xfca   : > { %v2079_v50 = vsub.f32 %v2071_v7, %v2077_v37 }
 0xfcc   : > { %v2082_v57 = vmul.f32 1.442695, %v2079_v50 }
 0xfcd   : > { %v1963_v31 = vpop.xlane.xlu0 %1962 }
 0xfce   : > { %v1967_v10 = vsub.f32 %v1959_v11, %v1963_v31 }
 0xfd0   : > { %v1969_v47 = vmul.f32 1.442695, %v1967_v10 }
 0xfd1   : > { %v1966_v19 = vpop.xlane.xlu0 %1965 }
 0xfd2   : > { %v1968_v33 = vsub.f32 %v1960_v41, %v1966_v19  ;;  %v4120_v19 = vunpack.i.l.bf16 %v4119_v35 }
 0xfd4   : > { %v1971_v38 = vmul.f32 1.442695, %v1968_v33 }
 0xfd5   : > { %v2366_v39 = vpop.xlane.xlu0 %2365 }
 0xfd6   : > { %4175 = vpow2.f32 %v1971_v38  ;;  %v2368_v15 = vsub.f32 %v2360_v22, %v2366_v39 }
 0xfd8   : > { %v2371_v53 = vmul.f32 1.442695, %v2368_v15 }
 0xfd9   : > { %v2565_v43 = vpop.xlane.xlu0 %2564 }
 0xfda   : > { %4177 = vpow2.f32 %v2371_v53  ;;  %v2569_v3 = vsub.f32 %v2561_v1, %v2565_v43  ;;  %v4126_v43 = vunpack.i.h.bf16 %v4124_v42 }
 0xfdb   : > { %4179 = vpow2.f32 %v1969_v47 }
 0xfdc   : > { %4181 = vpow2.f32 %v2369_v45  ;;  %v2571_v9 = vmul.f32 1.442695, %v2569_v3  ;;  %v4125_v45 = vunpack.i.l.bf16 %v4124_v42  ;;  %v3374_v3 = vld [vmem:[%s5107_s4 + $0x30] sm:$0xff] }
 0xfdd   : > { %v2568_v51 = vpop.xlane.xlu0 %2567  ;;  %4183 = vpow2.f32 %v2082_v57 }
 0xfde   : > { %v2570_v44 = vsub.f32 %v2562_v27, %v2568_v51  ;;  %v3960_v57 = vpack.c.bf16 %v4126_v43, %v4125_v45 }
 0xfe0   : > { %v4883_v52 = vpop.eup %4175  ;;  %v2573_v61 = vmul.f32 1.442695, %v2570_v44 }
 0xfe1   : > { %v1976_v60 = vsel %vm656_vm14, %v4883_v52, 0.0 }
 0xfe2   : > { %1977 = vadd.xlane.f32.xlu0 %v1976_v60  ;;  %4185 = vpow2.f32 %v2573_v61  ;;  %v3372_v60 = vld [vmem:[%s5107_s4 + $0x20] sm:$0xff] }
 0xfe3   : > { %4187 = vpow2.f32 %v2080_v2 }
 0xfe4   : > { %v4887_v48 = vpop.eup %4177  ;;  %4189 = vpow2.f32 %v2571_v9 }
 0xfe5   : > { %v2376_v16 = vsel %vm656_vm14, %v4887_v48, 0.0  ;;  %v4180_v62 = vpop.eup %4179 }
 0xfe6   : > { %2377 = vadd.xlane.f32.xlu0 %v2376_v16  ;;  %v1973_v7 = vsel %vm656_vm14, %v4180_v62, 0.0  ;;  %v4182_v8 = vpop.eup %4181  ;;  %v3964_v16 = vpack.c.bf16 %v3373_v54, %v3372_v60 }
 0xfe7   : > { %v2373_v11 = vsel %vm656_vm14, %v4182_v8, 0.0  ;;  %v4184_v14 = vpop.eup %4183 }
 0xfe8   : > { %v2087_v63 = vsel %vm656_vm14, %v4184_v14, 0.0 }
 0xfea   : > { %1974 = vadd.xlane.f32.xlu0 %v1973_v7  ;;  %v3375_v7 = vld [vmem:[%s5107_s4 + $0x38] sm:$0xff] }
 0xfec   : > { %v4895_v59 = vpop.eup %4185 }
 0xfed   : > { %v2578_v41 = vsel %vm656_vm14, %v4895_v59, 0.0  ;;  %v4188_v18 = vpop.eup %4187 }
 0xfee   : > { %2374 = vadd.xlane.f32.xlu0 %v2373_v11  ;;  %v2084_v21 = vsel %vm656_vm14, %v4188_v18, 0.0  ;;  %v4190_v22 = vpop.eup %4189 }
 0xfef   : > { %v2575_v23 = vsel %vm656_vm14, %v4190_v22, 0.0 }
 0xff2   : > { %2088 = vadd.xlane.f32.xlu0 %v2087_v63 }
 0xff6   : > { %2579 = vadd.xlane.f32.xlu0 %v2578_v41 }
 0xffa   : > { %2085 = vadd.xlane.f32.xlu0 %v2084_v21 }
 0xffe   : > { %2576 = vadd.xlane.f32.xlu0 %v2575_v23 }
0x1014   : > { %4113 = vrot.lane.b32.xlu0 %v4112_v40, %s5129_s16  ;;  %v4121_v40 = vunpack.i.h.bf16 %v4119_v35  ;;  %v3378_v35 = vld [vmem:[%s5108_s5 + $0x20] sm:$0xff]  ;;  %s5061_s16 = scalar_lea.hbm %s5114_s11, %s3407_s13 }
0x1016   : > { %v3950_v15 = vpack.c.bf16 %v4121_v40, %v4120_v19  ;;  %v3387_v40 = vld [vmem:[%s5110_s7 + $0x88] sm:$0xff] }
0x106f   : > { %v1978_v58 = vpop.xlane.xlu0 %1977 }
0x1073   : > { %v2378_v1 = vpop.xlane.xlu0 %2377 }
0x1077   : > { %v1975_v0 = vpop.xlane.xlu0 %1974 }
0x1078   : > { %4191 = vrcp.f32 %v1975_v0 }
0x107b   : > { %v2375_v27 = vpop.xlane.xlu0 %2374 }
0x107f   : > { %v2089_v29 = vpop.xlane.xlu0 %2088 }
0x1080   : > { %4193 = vrcp.f32 %v2089_v29 }
0x1082   : > { %v4192_v36 = vpop.eup %4191 }
0x1083   : > { %v2580_v6 = vpop.xlane.xlu0 %2579  ;;  %v1981_v39 = vmul.f32 %v4192_v36, %v4180_v62  ;;  %v3380_v36 = vld [vmem:[%s5108_s5 + $0x30] sm:$0xff] }
0x1087   : > { %v2086_v17 = vpop.xlane.xlu0 %2085 }
0x1088   : > { %4195 = vrcp.f32 %v2086_v17 }
0x1089   : > { %4197 = vrcp.f32 %v1978_v58 }
0x108a   : > { %4199 = vrcp.f32 %v2375_v27  ;;  %v4194_v32 = vpop.eup %4193 }
0x108b   : > { %v2577_v34 = vpop.xlane.xlu0 %2576  ;;  %v2093_v38 = vmul.f32 %v4194_v32, %v4184_v14  ;;  %4201 = vrcp.f32 %v2378_v1  ;;  %v2769_v14 = vrot.slane %v4774_v49, %v1479_v13 }
0x108c   : > { %4203 = vrcp.f32 %v2577_v34 }
0x108d   : > { %4205 = vrcp.f32 %v2580_v6 }
0x108f   : > { %v4114_v12 = vpop.permute.xlu0 %4113 }
0x1090   : > { %v4116_v37 = vunpack.i.h.bf16 %v4114_v12  ;;  %v4115_v31 = vunpack.i.l.bf16 %v4114_v12  ;;  %v3379_v12 = vld [vmem:[%s5108_s5 + $0x28] sm:$0xff] }
0x1092   : > { %v4196_v20 = vpop.eup %4195  ;;  %v3940_v33 = vpack.c.bf16 %v4116_v37, %v4115_v31  ;;  %v3972_v37 = vpack.c.bf16 %v3379_v12, %v3378_v35  ;;  %v3381_v31 = vld [vmem:[%s5108_s5 + $0x38] sm:$0xff] }
0x1093   : > { %v2092_v10 = vmul.f32 %v4196_v20, %v4188_v18  ;;  %v4198_v47 = vpop.eup %4197  ;;  %v3976_v32 = vpack.c.bf16 %v3381_v31, %v3380_v36  ;;  %v3386_v20 = vld [vmem:[%s5110_s7 + $0x80] sm:$0xff] }
0x1094   : > { %3941 = vmatprep.subr.bf16.mxu0 %v3940_v33  ;;  %v4200_v53 = vpop.eup %4199  ;;  %v1982_v50 = vmul.f32 %v4198_v47, %v4883_v52  ;;  %3973 = vmatprep.subr.bf16.mxu1 %v3972_v37  ;;  %v3980_v19 = vpack.c.bf16 %v3387_v40, %v3386_v20  ;;  %v2801_v47 = vrot.slane %v4774_v49, %v1511_v55  ;;  %v3388_v55 = vld [vmem:[%s5110_s7 + $0x90] sm:$0xff] }
0x1095   : > { %3707 = vmatprep.mubr.msk.f32.mxu0 %vm656_vm14, %v2092_v10  ;;  %v2381_v51 = vmul.f32 %v4200_v53, %v4182_v8  ;;  %v4202_v44 = vpop.eup %4201  ;;  %3975 = vmatpush3.bf16.msra.mxu1 %v3972_v37 }
0x1096   : > { %3708 = vmatmul.mubr.msk.f32.vlgmr.msra.gmra.mrb[14].mxu0 %vm656_vm14, %v2093_v38  ;;  %v4204_v61 = vpop.eup %4203  ;;  %v2382_v52 = vmul.f32 %v4202_v44, %v4887_v48  ;;  %v3968_v48 = vpack.c.bf16 %v3375_v7, %v3374_v3  ;;  %3977 = vmatprep.subr.bf16.mxu1 %v3976_v32  ;;  %v3393_v3 = vld [vmem:[%s5110_s7 + $0xb8] sm:$0xff]  ;;  %v3394_v7 = vld [vmem:[%s5110_s7 + $0xc0] sm:$0xff] }
0x1097   : > { %3943 = vmatpush3.bf16.msra.mxu0 %v3940_v33  ;;  %3714 = vmatprep.mubr.msk.f32.mxu0 %vm656_vm14, %v1981_v39  ;;  %v2583_v62 = vmul.f32 %v4204_v61, %v4190_v22  ;;  %v4206_v2 = vpop.eup %4205  ;;  %v3389_v61 = vld [vmem:[%s5110_s7 + $0x98] sm:$0xff] }
0x1098   : > { %3951 = vmatprep.subr.bf16.mxu0 %v3950_v15  ;;  %v2584_v8 = vmul.f32 %v4206_v2, %v4895_v59  ;;  %v3392_v2 = vld [vmem:[%s5110_s7 + $0xb0] sm:$0xff] }
0x1099   : > { %3979 = vmatpush3.bf16.msra.mxu1 %v3976_v32 }
0x109e   : > { %3715 = vmatmul.mubr.msk.f32.vlgmr.msra.gmra.mrb[14].mxu0 %vm656_vm14, %v1982_v50 }
0x109f   : > { %3953 = vmatpush3.bf16.msra.mxu0 %v3950_v15  ;;  %3728 = vmatprep.mubr.msk.f32.mxu0 %vm656_vm14, %v2381_v51  ;;  %v2807_v51 = vrot.slane %v4774_v49, %v1517_v56  ;;  %v3390_v56 = vld [vmem:[%s5110_s7 + $0xa0] sm:$0xff] }
0x10a0   : > { %3961 = vmatprep.subr.bf16.mxu0 %v3960_v57 }
0x10a6   : > { %3729 = vmatmul.mubr.msk.f32.vlgmr.msra.gmra.mrb[14].mxu0 %vm656_vm14, %v2382_v52  ;;  %v3984_v52 = vpack.c.bf16 %v3389_v61, %v3388_v55 }
0x10a7   : > { %3963 = vmatpush3.bf16.msra.mxu0 %v3960_v57  ;;  %3742 = vmatprep.mubr.msk.f32.mxu0 %vm656_vm14, %v2583_v62 }
0x10a8   : > { %3965 = vmatprep.subr.bf16.mxu0 %v3964_v16 }
0x10ae   : > { %3743 = vmatmul.mubr.msk.f32.vlgmr.msra.gmra.mrb[14].mxu0 %vm656_vm14, %v2584_v8  ;;  %v3992_v8 = vpack.c.bf16 %v3393_v3, %v3392_v2 }
0x10af   : > { %3967 = vmatpush3.bf16.msra.mxu0 %v3964_v16  ;;  %v3391_v16 = vld [vmem:[%s5110_s7 + $0xa8] sm:$0xff] }
0x10b0   : > { %3969 = vmatprep.subr.bf16.mxu0 %v3968_v48  ;;  %v3988_v62 = vpack.c.bf16 %v3391_v16, %v3390_v56  ;;  %v4286_v16 = vmov 0.0|0.0  }
0x10b1   : > { %4012 = vmatprep.subr.bf16.mxu1 %v4286_v16 }
0x10b3   : > { %3971 = vmatpush3.bf16.msra.mxu0 %v3968_v48  ;;  %v3395_v48 = vld [vmem:[%s5110_s7 + $0xc8] sm:$0xff] }
0x10b4   : > { %3981 = vmatprep.subr.bf16.mxu0 %v3980_v19 }
0x1181   : > { %v3744_v9 = vpop.f32.mrb[14].mxu0 }
0x1182   : > { %v2667_v11 = vpop.f32.mrb[15].mxu0 }
0x1183   : > { %3753 = vmatprep.mubr.msk.f32.mxu0 %vm427_vm0, %v2667_v11  ;;  %v3396_v11 = vld [vmem:[%s5110_s7 + $0xd0] sm:$0xff] }
0x1184   : > { %3754 = vmatmul.mubr.msk.f32.vlgmr.msra.gmra.mrb[16].mxu0 %vm427_vm0, %v3744_v9  ;;  %v3996_v9 = vpack.c.bf16 %v3395_v48, %v3394_v7 }
0x1185   : > { %3983 = vmatpush3.bf16.msra.mxu0 %v3980_v19 }
0x1186   : > { %3985 = vmatprep.subr.bf16.mxu0 %v3984_v52 }
0x1189   : > { %3987 = vmatpush3.bf16.msra.mxu0 %v3984_v52 }
0x118a   : > { %3989 = vmatprep.subr.bf16.mxu0 %v3988_v62 }
0x118d   : > { %3991 = vmatpush3.bf16.msra.mxu0 %v3988_v62 }
0x118e   : > { %3993 = vmatprep.subr.bf16.mxu0 %v3992_v8 }
0x1191   : > { %3995 = vmatpush3.bf16.msra.mxu0 %v3992_v8 }
0x1192   : > { %3997 = vmatprep.subr.bf16.mxu0 %v3996_v9 }
0x1195   : > { %3999 = vmatpush3.bf16.msra.mxu0 %v3996_v9  ;;  %v3022_v9 = vld [vmem:[%s5111_s8] sm:$0x3] }
0x1257   : > { %v3755_v63 = vpop.f32.mrb[16].mxu0 }
0x1258   : > { %v2765_v41 = vadd.f32 %v3755_v63, %v4749_v25  ;;  %v2755_v59 = vpop.f32.mrb[17].mxu0 }
0x1259   : > { %v2764_v18 = vadd.f32 %v2755_v59, %v4747_v24  ;;  %v3399_v59 = vld [vmem:[%s5110_s7 + $0xe8] sm:$0xff] }
0x125a   : > { %v4935_v21 = vadd.f32 %v2769_v14, %v2765_v41  ;;  %v3398_v41 = vld [vmem:[%s5110_s7 + $0xe0] sm:$0xff] }
0x125b   : > { %v4937_v22 = vadd.f32 %v2769_v14, %v2764_v18  ;;  %v3397_v14 = vld [vmem:[%s5110_s7 + $0xd8] sm:$0xff]  ;;  %v4004_v18 = vpack.c.bf16 %v3399_v59, %v3398_v41  ;;  %v3058_v59 = vrot.slane %v3022_v9, %v4436_v30 }
0x125c   : > { %v2775_v23 = vsel %vm427_vm0, %v4935_v21, 0.0  ;;  %v4000_v63 = vpack.c.bf16 %v3397_v14, %v3396_v11  ;;  %v3052_v11 = vrot.slane %v3022_v9, %v4428_v28  ;;  %v3139_v28 = vld [vmem:[%s5112_s9 + $0x8] sm:$0xff] }
0x125d   : > { %2776 = vadd.xlane.f32.xlu0 %v2775_v23  ;;  %v2772_v58 = vsel %vm427_vm0, %v4937_v22, 0.0  ;;  %v3400_v23 = vld [vmem:[%s5110_s7 + $0xf0] sm:$0xff] }
0x125e   : > { %2773 = vadd.xlane.f32.xlu1 %v2772_v58  ;;  %4001 = vmatprep.subr.bf16.mxu0 %v4000_v63  ;;  %v3401_v58 = vld [vmem:[%s5110_s7 + $0xf8] sm:$0xff] }
0x125f   : > { %4003 = vmatpush3.bf16.msra.mxu0 %v4000_v63 }
0x1260   : > { %4005 = vmatprep.subr.bf16.mxu0 %v4004_v18 }
0x1263   : > { %4007 = vmatpush3.bf16.msra.mxu0 %v4004_v18 }
0x12ea   : > { %v2777_v1 = vpop.xlane.xlu0 %2776 }
0x12eb   : > { %v2779_v13 = vmul.f32 0.03125, %v2777_v1  ;;  %v2774_v0 = vpop.xlane.xlu1 %2773  ;;  %v4008_v1 = vpack.c.bf16 %v3401_v58, %v3400_v23 }
0x12ec   : > { %v2778_v27 = vmul.f32 0.03125, %v2774_v0 }
0x12ed   : > { %v2781_v25 = vsub.f32 %v4935_v21, %v2779_v13  ;;  %4009 = vmatprep.subr.bf16.mxu0 %v4008_v1  ;;  %v3383_v13 = vld [vmem:[%s5109_s6 + $0x1] ss:$0 sm:$0xff] }
0x12ee   : > { %v2780_v24 = vsub.f32 %v4937_v22, %v2778_v27  ;;  %4011 = vmatpush3.bf16.msra.mxu0 %v4008_v1 }
0x12ef   : > { %v2783_v29 = vmul.f32 %v2781_v25, %v2781_v25 }
0x12f0   : > { %v2782_v6 = vmul.f32 %v2780_v24, %v2780_v24 }
0x12f1   : > { %v2787_v17 = vsel %vm427_vm0, %v2783_v29, 0.0 }
0x12f2   : > { %2788 = vadd.xlane.f32.xlu0 %v2787_v17  ;;  %v2784_v34 = vsel %vm427_vm0, %v2782_v6, 0.0 }
0x12f3   : > { %2785 = vadd.xlane.f32.xlu1 %v2784_v34 }
0x137f   : > { %v2789_v33 = vpop.xlane.xlu0 %2788 }
0x1380   : > { %v2791_v10 = vmul.f32 0.03125, %v2789_v33  ;;  %v2786_v38 = vpop.xlane.xlu1 %2785 }
0x1381   : > { %v2790_v39 = vmul.f32 0.03125, %v2786_v38 }
0x1382   : > { %v2793_v15 = vadd.f32 1e-05, %v2791_v10 }
0x1383   : > { %v2792_v42 = vadd.f32 1e-05, %v2790_v39 }
0x1384   : > { %4207 = vrsqrt.f32 %v2793_v15 }
0x1385   : > { %4209 = vrsqrt.f32 %v2792_v42  ;;  %v3019_v42 = vrot.slane %v4774_v49, %v1726_v5 }
0x138e   : > { %v4208_v53 = vpop.eup %4207 }
0x138f   : > { %v4210_v43 = vpop.eup %4209  ;;  %v2797_v45 = vmul.f32 %v4208_v53, %v2781_v25 }
0x1390   : > { %v2796_v50 = vmul.f32 %v4210_v43, %v2780_v24 }
0x1391   : > { %v2803_v57 = vmul.f32 %v2801_v47, %v2797_v45 }
0x1392   : > { %v2802_v44 = vmul.f32 %v2801_v47, %v2796_v50 }
0x1393   : > { %v2809_v54 = vadd.f32 %v2807_v51, %v2803_v57 }
0x1394   : > { %v2808_v60 = vadd.f32 %v2807_v51, %v2802_v44 }
0x1396   : > { %3764 = vmatprep.mubr.msk.f32.mxu1 %vm427_vm0, %v2808_v60 }
0x1397   : > { %3765 = vmatmul.mubr.msk.f32.vlgmr.msra.gmra.mrb[14].mxu1 %vm427_vm0, %v2809_v54 }
0x1398   : > { %3806 = vmatprep.mubr.msk.f32.mxu1 %vm4287_vm4, %v4283_v46 }
0x146a   : > { %v3766_v0 = vpop.f32.mrb[14].mxu1 }
0x146b   : > { %v2901_v27 = vadd.f32 %v3766_v0, %v3383_v13  ;;  %v2895_v25 = vpop.f32.mrb[15].mxu1  ;;  %v3402_v0 = vsel %vm3061_vm5, 1.0, %v4283_v46 }
0x146c   : > { %v2896_v24 = vadd.f32 %v3383_v13, %v2895_v25  ;;  %v3064_v30 = vmul.f32 0.125, %v3402_v0 }
0x146d   : > { %v2907_v29 = vmul.f32 0.044715, %v2901_v27  ;;  %v2905_v38 = vmul.f32 0.5, %v2901_v27 }
0x146e   : > { %v2906_v6 = vmul.f32 0.044715, %v2896_v24  ;;  %v2904_v33 = vmul.f32 0.5, %v2896_v24 }
0x146f   : > { %v2909_v17 = vmul.f32 %v2907_v29, %v2901_v27  ;;  %v4019_v29 = vpack.c.bf16 %v3141_v4, %v3140_v26 }
0x1470   : > { %v2908_v34 = vmul.f32 %v2906_v6, %v2896_v24 }
0x1471   : > { %v2911_v35 = vmul.f32 %v2909_v17, %v2901_v27 }
0x1472   : > { %v2910_v12 = vmul.f32 %v2908_v34, %v2896_v24  ;;  %v3404_v34 = vld [vmem:[%s5113_s10] ss:$0 sm:$0xff] }
0x1473   : > { %v2913_v36 = vadd.f32 %v2911_v35, %v2901_v27  ;;  %v3138_v27 = vld [vmem:[%s5112_s9] sm:$0xff] }
0x1474   : > { %v2912_v37 = vadd.f32 %v2910_v12, %v2896_v24  ;;  %v4016_v24 = vpack.c.bf16 %v3139_v28, %v3138_v27 }
0x1475   : > { %v2915_v31 = vmul.f32 0.7978846, %v2913_v36 }
0x1476   : > { %v2914_v32 = vmul.f32 0.7978846, %v2912_v37 }
0x1477   : > { %4211 = vtanh.f32 %v2915_v31 }
0x1478   : > { %4213 = vtanh.f32 %v2914_v32 }
0x1481   : > { %v4212_v20 = vpop.eup %4211 }
0x1482   : > { %v4214_v40 = vpop.eup %4213  ;;  %v2919_v19 = vadd.f32 1.0, %v4212_v20 }
0x1483   : > { %v2918_v10 = vadd.f32 1.0, %v4214_v40 }
0x1484   : > { %v2921_v15 = vmul.f32 %v2919_v19, %v2905_v38 }
0x1485   : > { %v2920_v39 = vmul.f32 %v2918_v10, %v2904_v33 }
0x1487   : > { %3799 = vmatprep.mubr.f32.mxu0 %v2920_v39 }
0x1488   : > { %3800 = vmatmul.mubr.f32.vlgmr.msra.gmra.mrb[18].mxu0 %v2921_v15 }
0x155b   : > { %v3801_v47 = vpop.f32.mrb[18].mxu0 }
0x155c   : > { %v3015_v53 = vadd.f32 %v3801_v47, %v4935_v21  ;;  %v3005_v43 = vpop.f32.mrb[19].mxu0 }
0x155d   : > { %v3014_v45 = vadd.f32 %v3005_v43, %v4937_v22 }
0x155e   : > { %v3021_v50 = vadd.f32 %v3019_v42, %v3015_v53 }
0x155f   : > { %v3020_v51 = vadd.f32 %v3019_v42, %v3014_v45 }
0x1560   : > { %v3026_v57 = vsel %vm427_vm0, %v3021_v50, 0.0 }
0x1561   : > { %3027 = vadd.xlane.f32.xlu0 %v3026_v57  ;;  %v3023_v44 = vsel %vm427_vm0, %v3020_v51, 0.0 }
0x1562   : > { %3024 = vadd.xlane.f32.xlu1 %v3023_v44 }
0x15ee   : > { %v3028_v60 = vpop.xlane.xlu0 %3027 }
0x15ef   : > { %v3030_v54 = vmul.f32 0.03125, %v3028_v60  ;;  %v3025_v55 = vpop.xlane.xlu1 %3024 }
0x15f0   : > { %v3029_v61 = vmul.f32 0.03125, %v3025_v55 }
0x15f1   : > { %v3032_v52 = vsub.f32 %v3021_v50, %v3030_v54 }
0x15f2   : > { %v3031_v5 = vsub.f32 %v3020_v51, %v3029_v61 }
0x15f3   : > { %v3034_v49 = vmul.f32 %v3032_v52, %v3032_v52 }
0x15f4   : > { %v3033_v56 = vmul.f32 %v3031_v5, %v3031_v5 }
0x15f5   : > { %v3038_v21 = vsel %vm427_vm0, %v3034_v49, 0.0 }
0x15f6   : > { %3039 = vadd.xlane.f32.xlu0 %v3038_v21  ;;  %v3035_v22 = vsel %vm427_vm0, %v3033_v56, 0.0 }
0x15f7   : > { %3036 = vadd.xlane.f32.xlu1 %v3035_v22 }
0x1683   : > { %v3040_v62 = vpop.xlane.xlu0 %3039 }
0x1684   : > { %v3042_v2 = vmul.f32 0.03125, %v3040_v62  ;;  %v3037_v3 = vpop.xlane.xlu1 %3036 }
0x1685   : > { %v3041_v7 = vmul.f32 0.03125, %v3037_v3 }
0x1686   : > { %v3044_v8 = vadd.f32 1e-05, %v3042_v2 }
0x1687   : > { %v3043_v48 = vadd.f32 1e-05, %v3041_v7 }
0x1688   : > { %4215 = vrsqrt.f32 %v3044_v8 }
0x1689   : > { %4217 = vrsqrt.f32 %v3043_v48 }
0x1692   : > { %v4216_v14 = vpop.eup %4215 }
0x1693   : > { %v4218_v63 = vpop.eup %4217  ;;  %v3048_v41 = vmul.f32 %v4216_v14, %v3032_v52 }
0x1694   : > { %v3047_v18 = vmul.f32 %v4218_v63, %v3031_v5 }
0x1695   : > { %v3054_v23 = vmul.f32 %v3052_v11, %v3048_v41 }
0x1696   : > { %v3053_v58 = vmul.f32 %v3052_v11, %v3047_v18 }
0x1697   : > { %v3060_v1 = vadd.f32 %v3058_v59, %v3054_v23 }
0x1698   : > { %v3059_v13 = vadd.f32 %v3058_v59, %v3053_v58 }
0x169a   : > { %v4013_v25 = vpack.c.bf16 %v3060_v1, %v3059_v13 }
0x169c   : > { %4014 = vmatpush3.bf16.msra.mxu1 %v4013_v25 }
0x169d   : > { %4015 = vmatprep.subr.bf16.mxu1 %v4286_v16 }
0x169f   : > { %3807 = vmatmul.mubr.msk.f32.vlgmr.msra.gmra.mrb[16].mxu1 %vm656_vm14, %v3064_v30 }
0x16a0   : > { %4017 = vmatpush3.bf16.msra.mxu1 %v4016_v24  ;;  %3817 = vmatprep.mubr.msk.f32.mxu1 %vm4287_vm4, %v4283_v46 }
0x16a1   : > { %4018 = vmatprep.subr.bf16.mxu1 %v4286_v16 }
0x16a4   : > { %4020 = vmatpush3.bf16.msra.mxu1 %v4019_v29 }
0x1772   : > { %v3134_v6 = vpop.f32.mrb[16].mxu1 }
0x1773   : > { %v3808_v17 = vpop.f32.mrb[17].mxu1  ;;  %3818 = vmatmul.mubr.msk.f32.vlgmr.msra.gmra.mrb[18].mxu1 %vm427_vm0, %v3134_v6 }
0x1846   : > { %v3218_v35 = vpop.f32.mrb[18].mxu1 }
0x1847   : > { %v3219_v12 = vadd.f32 %v3404_v34, %v3218_v35  ;;  %v3819_v36 = vpop.f32.mrb[19].mxu1 }
0x1849   : > { %3222 = vst [vmem:[%s380_s14] sm:$0x3] %v3219_v12 }
0x184a   : > { %4232 = shalt.err (!%p4229_p3)
}
0x184b   : > { %s4233_s25 = scalar_lea.hbm %s5061_s16, 32  ;;  %s4237_s22 = scalar_lea.hbm %s5114_s11, 64 }
0x184c   : > { %p4234_p4 = scmp.ne.s32.totalorder %s5061_s16, %s4233_s25  ;;  %p4238_p9 = scmp.lt.u32.totalorder %s5061_s16, %s5114_s11 }
0x184d   : > { %p4239_p10 = scmp.lt.u32.totalorder %s4237_s22, %s4233_s25  ;;  %p4241_p12 = scmp.lt.u32.totalorder %s4233_s25, %s5061_s16 }
0x184e   : > { %p4235_p7 = pnand %p4234_p4, %p4387_p5 }
0x184f   : > { %p4240_p11 = por %p4239_p10, %p4238_p9 }
0x1850   : > { %p4236_p8 = pneg %p4235_p7 }
0x1851   : > { %p4242_p13 = por %p4241_p12, %p4240_p11 }
0x1853   : > { %p4243_p0 = pnand %p4242_p13, %p4236_p8 }
0x1855   : > { %4246 = shalt.err (!%p4243_p0)
}
0x1856   : > { %4033 = dma.vmem_to_hbm [thread:$0]  (%p4387_p5), %s5063_s15, 32, %s5061_s16, %s3224_s0  }
0x1857 PF: > { %p4039_p1 = scmp.ge.s32.totalorder %s4281_s20, 2  ;;  %s3249_s30 = sand.u32 1, %s4269_s17  }
0x1858   : > { %s3250_s29 = scalar_lea.sflag [#allocation3], %s3249_s30 }
0x1859   : > { %p4036_p2 = pnand %p4039_p1, %p4391_p6 }
0x185b   : > { %4264 = dma.done.wait (!%p4036_p2), %s3250_s29, 32  }
0x185c   : > { %4266 = vsyncadd (!%p4036_p2), %s3250_s29, 4294967264  ;;  %p21_p3 = scmp.ge.s32.totalorder %s4374_s23, 4   ;;  %s5130_s17 = smov %s4273_s18 }
0x185d   : > { %s5131_s18 = smov %s4277_s19  ;;  %s5132_s19 = smov %s4385_s26 }
0x185e   : > { %s5133_s20 = smov %s4374_s23  ;;  %23 = sbr.rel (!%p21_p3) target bundleno = 5 (0x5), region = 106 }
0x1865   :  { %3255 = vsyncpa [#allocation3], 1 }
0x1866   :  { %3257 = vsyncpa [#allocation3 + $0x1], 1 }

</bundles_post_ra>
